<compile_context>
chip_gen: v7x
topology: tpu7x:2x2x1
jax: 0.10.0
libtpu: 0.0.40
codegen_flags: <defaults>
</compile_context>

<pallas_src>
import jax
import jax.numpy as jnp
from jax.experimental import pallas as pl
from jax.experimental.pallas import tpu as pltpu


def _nonlocal_kernel(wg_sm, bg_sm, wt_sm, bt_sm, wp_sm, bp_sm, scal_sm,
                     s_ref, temp_ref, res_ref, dis_ref, anc_ref):
    # temp_ref block: (BB, C, T*V) lane-dense.  Weights/biases live in SMEM.
    bb, c, _tv = temp_ref.shape
    ic = wt_sm.shape[0]
    s_mean = s_ref[...]            # (T*V, V) averaging matrix (entries 1/T)
    soft_scale = scal_sm[0]

    for b in range(bb):            # static unroll over the bodies in this tile
        temp_b = temp_ref[b]       # (C, T*V), full-128-lane rows

        # x = temp.mean(T): one deep-contraction MXU matmul, keeps V on lanes.
        x_b = jax.lax.dot_general(temp_b, s_mean, (((1,), (0,)), ((), ())),
                                  preferred_element_type=jnp.float32)   # (C, V)
        xr = [x_b[j:j + 1, :] for j in range(c)]                         # C rows of (1, V)

        # 1x1 convs unrolled as VPU FMAs with SMEM scalar weights (no MXU).
        def lin_rows(w_sm, b_sm, n_out):
            rows = []
            for o in range(n_out):
                acc = xr[0] * w_sm[o, 0]
                for j in range(1, c):
                    acc = acc + xr[j] * w_sm[o, j]
                rows.append(acc + b_sm[o])
            return rows

        th = lin_rows(wt_sm, bt_sm, ic)    # theta rows, each (1, V)
        ph = lin_rows(wp_sm, bp_sm, ic)    # phi rows
        g = lin_rows(wg_sm, bg_sm, c)      # g rows

        # f.sum(-1) without materializing f:
        #   d[v] = sum_ic theta[ic, v] * (sum_v' phi[ic, v'])
        d = th[0] * jnp.sum(ph[0], axis=1, keepdims=True)
        for o in range(1, ic):
            d = d + th[o] * jnp.sum(ph[o], axis=1, keepdims=True)
        d = d * soft_scale                                               # (1, V)

        # softmax over V (lane axis)
        m = jnp.max(d, axis=1, keepdims=True)
        e = jnp.exp(d - m)
        p = e / jnp.sum(e, axis=1, keepdims=True)                        # (1, V)

        # anchor[o] = sum_v g[o, v] * dis[v]
        a = [jnp.sum(g[o] * p, axis=1, keepdims=True) for o in range(c)]  # (1, 1) each
        anchor_col = jnp.concatenate(a, axis=0)                           # (C, 1)
        anchor_row = jnp.concatenate(a, axis=1)                           # (1, C)

        res_ref[b] = temp_b - anchor_col     # full-lane-width residual store
        dis_ref[b] = p
        anc_ref[b] = anchor_row

    # TODO(synk): torch.argmax(dis, dim=1) is computed in the reference but
    # never used / returned, so it is intentionally omitted here.


def nonlocal_block_forward(inp, params, *, soft_scale=20.0, bodies_per_step=2):
    """inp: (N, T, 2*V*3) float32.  Returns (res, dis, center_xyz)."""
    # TODO(synk): sub_sample=True (MaxPool on g/phi) is shape-inconsistent with
    # this forward's einsum; kernel assumes sub_sample=False like the original port.
    wg, bg, wt, bt, wp, bp = params        # PyTorch 1x1-conv weights (out,in), biases (out,)
    n, t, dim = inp.shape
    v = dim // (2 * 3)
    c = 3
    b = n * 2
    tv = t * v

    # PyTorch view/permute plumbing -> channels-first, lane-dense (B, C, T*V).
    temp_cf = (inp.reshape(n, t, 2, v, c)
                  .transpose(0, 2, 4, 1, 3)       # (N, 2, C, T, V)
                  .reshape(b, c, tv))

    # Constant averaging matrix: temp_flat @ S == temp.mean over T (keeps V on lanes).
    s_mean = jnp.tile(jnp.eye(v, dtype=jnp.float32), (t, 1)) * jnp.float32(1.0 / t)

    f32 = jnp.float32
    wg = wg.astype(f32); bg = bg.astype(f32)
    wt = wt.astype(f32); bt = bt.astype(f32)
    wp = wp.astype(f32); bp = bp.astype(f32)
    scal = jnp.array([soft_scale], dtype=f32)

    # Batch bodies per grid step (keep grid extent >= 2 for v7x's two TCs).
    bb = max(1, min(int(bodies_per_step), b))
    while b % bb:
        bb -= 1
    grid = (b // bb,)

    out_shapes = (
        jax.ShapeDtypeStruct((b, c, tv), f32),    # res (channels-first, lane-dense)
        jax.ShapeDtypeStruct((b, 1, v), f32),     # dis (V on lanes)
        jax.ShapeDtypeStruct((b, 1, c), f32),     # anchor
    )
    grid_spec = pltpu.PrefetchScalarGridSpec(
        num_scalar_prefetch=7,                    # Wg, bg, Wt, bt, Wp, bp, soft_scale -> SMEM
        grid=grid,
        in_specs=[
            pl.BlockSpec((tv, v), lambda i, *_: (0, 0)),          # averaging matrix (resident)
            pl.BlockSpec((bb, c, tv), lambda i, *_: (i, 0, 0)),   # temp tile: bb bodies / step
        ],
        out_specs=[
            pl.BlockSpec((bb, c, tv), lambda i, *_: (i, 0, 0)),
            pl.BlockSpec((bb, 1, v), lambda i, *_: (i, 0, 0)),
            pl.BlockSpec((bb, 1, c), lambda i, *_: (i, 0, 0)),
        ],
    )
    res_cf, dis3, anc3 = pl.pallas_call(
        _nonlocal_kernel,
        out_shape=out_shapes,
        grid_spec=grid_spec,
        compiler_params=pltpu.CompilerParams(dimension_semantics=("parallel",)),
    )(wg, bg, wt, bt, wp, bp, scal, s_mean, temp_cf)

    # res.permute(2,0,3,1).reshape(-1, C) — matches temp.permute(2,0,3,1).view(-1, C)
    res = jnp.transpose(res_cf.reshape(b, c, t, v), (2, 0, 3, 1)).reshape(-1, c)
    dis = dis3[:, 0, :]            # (B, V)
    center_xyz = anc3[:, 0, :]     # (B, C)
    return res, dis, center_xyz


def _reference_forward(inp, params, *, soft_scale=20.0):
    """Pure-JAX reference mirroring the PyTorch forward, for validation."""
    wg, bg, wt, bt, wp, bp = params
    n, t, d = inp.shape
    v = d // 6
    temp = inp.reshape(n, t, 2, v, 3).transpose(0, 2, 4, 1, 3).reshape(n * 2, 3, t, v)
    x = temp.mean(axis=-2)                                          # (B, 3, V)
    g_x = jnp.einsum('oc,bcv->bov', wg, x) + bg[None, :, None]      # (B, 3, V)
    th = jnp.einsum('oc,bcv->bov', wt, x) + bt[None, :, None]       # (B, IC, V)
    ph = jnp.einsum('oc,bcv->bov', wp, x) + bp[None, :, None]       # (B, IC, V)
    f = jnp.einsum('bci,bcj->bij', th, ph)                          # (B, V, V)
    dis = jax.nn.softmax(f.sum(-1) * soft_scale, axis=-1)           # (B, V)
    anchor = jnp.einsum('bcv,bv->bc', g_x, dis)                     # (B, 3)
    res = temp - anchor[:, :, None, None]
    res = jnp.transpose(res, (2, 0, 3, 1)).reshape(-1, 3)
    return res, dis, anchor


if __name__ == "__main__":
    # Module config consistent with the forward pass:
    #   dimension=1, sub_sample=False, in_channels=3, inter_channels=4.
    N, T, V = 2, 8, 16
    C_IN, C_INTER = 3, 4
    SOFT_SCALE = 20.0

    key = jax.random.PRNGKey(0)
    inp = jax.random.normal(key, (N, T, 2 * V * 3), dtype=jnp.float32)

    # Deterministic synthetic parameters (PyTorch 1x1-conv weight shapes (out, in)).
    wkey = jax.random.PRNGKey(1)
    k = jax.random.split(wkey, 6)
    Wg = jax.random.normal(k[0], (C_IN, C_IN), dtype=jnp.float32) * 0.5
    bg = jax.random.normal(k[1], (C_IN,), dtype=jnp.float32) * 0.1
    Wt = jax.random.normal(k[2], (C_INTER, C_IN), dtype=jnp.float32) * 0.5
    bt = jax.random.normal(k[3], (C_INTER,), dtype=jnp.float32) * 0.1
    Wp = jax.random.normal(k[4], (C_INTER, C_IN), dtype=jnp.float32) * 0.5
    bp = jax.random.normal(k[5], (C_INTER,), dtype=jnp.float32) * 0.1
    params = (Wg, bg, Wt, bt, Wp, bp)

    res, dis, center_xyz = nonlocal_block_forward(inp, params, soft_scale=SOFT_SCALE)
    jax.block_until_ready((res, dis, center_xyz))

    # Sanity check against the pure-JAX reference.
    r_ref, d_ref, a_ref = _reference_forward(inp, params, soft_scale=SOFT_SCALE)
    assert res.shape == (T * 2 * N * V, 3) and dis.shape == (2 * N, V) and center_xyz.shape == (2 * N, 3)
    assert jnp.allclose(res, r_ref, atol=1e-3, rtol=1e-3)
    assert jnp.allclose(dis, d_ref, atol=1e-3, rtol=1e-3)
    assert jnp.allclose(center_xyz, a_ref, atol=1e-3, rtol=1e-3)

    print("KERNEL_OK")
</pallas_src>

<mosaic_0001>
module attributes {stable_mosaic.version = 11 : i64} {
  func.func @_nonlocal_kernel(%arg0: i32, %arg1: memref<3x3xf32, #tpu.memory_space<smem>>, %arg2: memref<3xf32, #tpu.memory_space<smem>>, %arg3: memref<4x3xf32, #tpu.memory_space<smem>>, %arg4: memref<4xf32, #tpu.memory_space<smem>>, %arg5: memref<4x3xf32, #tpu.memory_space<smem>>, %arg6: memref<4xf32, #tpu.memory_space<smem>>, %arg7: memref<1xf32, #tpu.memory_space<smem>>, %arg8: memref<128x16xf32, #tpu.memory_space<vmem>>, %arg9: memref<2x3x128xf32, #tpu.memory_space<vmem>>, %arg10: memref<2x3x128xf32, #tpu.memory_space<vmem>>, %arg11: memref<2x1x16xf32, #tpu.memory_space<vmem>>, %arg12: memref<2x1x3xf32, #tpu.memory_space<vmem>>) attributes {dimension_semantics = [#tpu.dimension_semantics<parallel>], iteration_bounds = array<i64: 2>, scalar_prefetch = 7 : i64, scratch_operands = 0 : i64, tpu.core_type = #tpu.core_type<tc>, window_params = [{pipeline_mode = #tpu.pipeline_mode<synchronous>, transform_indices = @transform_0, window_bounds = array<i64: 128, 16>}, {transform_indices = @transform_1, window_bounds = array<i64: 2, 3, 128>}, {transform_indices = @transform_2, window_bounds = array<i64: 2, 3, 128>}, {transform_indices = @transform_3, window_bounds = array<i64: 2, 1, 16>}, {transform_indices = @transform_4, window_bounds = array<i64: 2, 1, 3>}]} {
    %c0 = arith.constant 0 : index
    %c0_0 = arith.constant 0 : index
    %0 = vector.load %arg8[%c0, %c0_0] : memref<128x16xf32, #tpu.memory_space<vmem>>, vector<128x16xf32>
    %c0_1 = arith.constant 0 : index
    %1 = memref.load %arg7[%c0_1] : memref<1xf32, #tpu.memory_space<smem>>
    %c0_2 = arith.constant 0 : index
    %c0_3 = arith.constant 0 : index
    %c0_4 = arith.constant 0 : index
    %2 = vector.load %arg9[%c0_2, %c0_3, %c0_4] : memref<2x3x128xf32, #tpu.memory_space<vmem>>, vector<1x3x128xf32>
    %3 = vector.shape_cast %2 : vector<1x3x128xf32> to vector<3x128xf32>
    %cst = arith.constant dense<0.000000e+00> : vector<3x16xf32>
    %4 = tpu.matmul %3, %0, %cst {dimension_numbers = #tpu.dot_dimension_numbers<[1], [0], [0], [1], [0, 0, 1, 1], [], []>} : vector<3x128xf32>, vector<128x16xf32>, vector<3x16xf32> -> vector<3x16xf32>
    %5 = vector.extract_strided_slice %4 {offsets = [0, 0], sizes = [1, 16], strides = [1, 1]} : vector<3x16xf32> to vector<1x16xf32>
    %6 = vector.extract_strided_slice %4 {offsets = [1, 0], sizes = [1, 16], strides = [1, 1]} : vector<3x16xf32> to vector<1x16xf32>
    %7 = vector.extract_strided_slice %4 {offsets = [2, 0], sizes = [1, 16], strides = [1, 1]} : vector<3x16xf32> to vector<1x16xf32>
    %c0_5 = arith.constant 0 : index
    %c0_6 = arith.constant 0 : index
    %8 = memref.load %arg3[%c0_5, %c0_6] : memref<4x3xf32, #tpu.memory_space<smem>>
    %9 = vector.broadcast %8 : f32 to vector<1x16xf32>
    %10 = arith.mulf %5, %9 : vector<1x16xf32>
    %c0_7 = arith.constant 0 : index
    %c1 = arith.constant 1 : index
    %11 = memref.load %arg3[%c0_7, %c1] : memref<4x3xf32, #tpu.memory_space<smem>>
    %12 = vector.broadcast %11 : f32 to vector<1x16xf32>
    %13 = arith.mulf %6, %12 : vector<1x16xf32>
    %14 = arith.addf %10, %13 : vector<1x16xf32>
    %c0_8 = arith.constant 0 : index
    %c2 = arith.constant 2 : index
    %15 = memref.load %arg3[%c0_8, %c2] : memref<4x3xf32, #tpu.memory_space<smem>>
    %16 = vector.broadcast %15 : f32 to vector<1x16xf32>
    %17 = arith.mulf %7, %16 : vector<1x16xf32>
    %18 = arith.addf %14, %17 : vector<1x16xf32>
    %c0_9 = arith.constant 0 : index
    %19 = memref.load %arg4[%c0_9] : memref<4xf32, #tpu.memory_space<smem>>
    %20 = vector.broadcast %19 : f32 to vector<1x16xf32>
    %21 = arith.addf %18, %20 : vector<1x16xf32>
    %c1_10 = arith.constant 1 : index
    %c0_11 = arith.constant 0 : index
    %22 = memref.load %arg3[%c1_10, %c0_11] : memref<4x3xf32, #tpu.memory_space<smem>>
    %23 = vector.broadcast %22 : f32 to vector<1x16xf32>
    %24 = arith.mulf %5, %23 : vector<1x16xf32>
    %c1_12 = arith.constant 1 : index
    %c1_13 = arith.constant 1 : index
    %25 = memref.load %arg3[%c1_12, %c1_13] : memref<4x3xf32, #tpu.memory_space<smem>>
    %26 = vector.broadcast %25 : f32 to vector<1x16xf32>
    %27 = arith.mulf %6, %26 : vector<1x16xf32>
    %28 = arith.addf %24, %27 : vector<1x16xf32>
    %c1_14 = arith.constant 1 : index
    %c2_15 = arith.constant 2 : index
    %29 = memref.load %arg3[%c1_14, %c2_15] : memref<4x3xf32, #tpu.memory_space<smem>>
    %30 = vector.broadcast %29 : f32 to vector<1x16xf32>
    %31 = arith.mulf %7, %30 : vector<1x16xf32>
    %32 = arith.addf %28, %31 : vector<1x16xf32>
    %c1_16 = arith.constant 1 : index
    %33 = memref.load %arg4[%c1_16] : memref<4xf32, #tpu.memory_space<smem>>
    %34 = vector.broadcast %33 : f32 to vector<1x16xf32>
    %35 = arith.addf %32, %34 : vector<1x16xf32>
    %c2_17 = arith.constant 2 : index
    %c0_18 = arith.constant 0 : index
    %36 = memref.load %arg3[%c2_17, %c0_18] : memref<4x3xf32, #tpu.memory_space<smem>>
    %37 = vector.broadcast %36 : f32 to vector<1x16xf32>
    %38 = arith.mulf %5, %37 : vector<1x16xf32>
    %c2_19 = arith.constant 2 : index
    %c1_20 = arith.constant 1 : index
    %39 = memref.load %arg3[%c2_19, %c1_20] : memref<4x3xf32, #tpu.memory_space<smem>>
    %40 = vector.broadcast %39 : f32 to vector<1x16xf32>
    %41 = arith.mulf %6, %40 : vector<1x16xf32>
    %42 = arith.addf %38, %41 : vector<1x16xf32>
    %c2_21 = arith.constant 2 : index
    %c2_22 = arith.constant 2 : index
    %43 = memref.load %arg3[%c2_21, %c2_22] : memref<4x3xf32, #tpu.memory_space<smem>>
    %44 = vector.broadcast %43 : f32 to vector<1x16xf32>
    %45 = arith.mulf %7, %44 : vector<1x16xf32>
    %46 = arith.addf %42, %45 : vector<1x16xf32>
    %c2_23 = arith.constant 2 : index
    %47 = memref.load %arg4[%c2_23] : memref<4xf32, #tpu.memory_space<smem>>
    %48 = vector.broadcast %47 : f32 to vector<1x16xf32>
    %49 = arith.addf %46, %48 : vector<1x16xf32>
    %c3 = arith.constant 3 : index
    %c0_24 = arith.constant 0 : index
    %50 = memref.load %arg3[%c3, %c0_24] : memref<4x3xf32, #tpu.memory_space<smem>>
    %51 = vector.broadcast %50 : f32 to vector<1x16xf32>
    %52 = arith.mulf %5, %51 : vector<1x16xf32>
    %c3_25 = arith.constant 3 : index
    %c1_26 = arith.constant 1 : index
    %53 = memref.load %arg3[%c3_25, %c1_26] : memref<4x3xf32, #tpu.memory_space<smem>>
    %54 = vector.broadcast %53 : f32 to vector<1x16xf32>
    %55 = arith.mulf %6, %54 : vector<1x16xf32>
    %56 = arith.addf %52, %55 : vector<1x16xf32>
    %c3_27 = arith.constant 3 : index
    %c2_28 = arith.constant 2 : index
    %57 = memref.load %arg3[%c3_27, %c2_28] : memref<4x3xf32, #tpu.memory_space<smem>>
    %58 = vector.broadcast %57 : f32 to vector<1x16xf32>
    %59 = arith.mulf %7, %58 : vector<1x16xf32>
    %60 = arith.addf %56, %59 : vector<1x16xf32>
    %c3_29 = arith.constant 3 : index
    %61 = memref.load %arg4[%c3_29] : memref<4xf32, #tpu.memory_space<smem>>
    %62 = vector.broadcast %61 : f32 to vector<1x16xf32>
    %63 = arith.addf %60, %62 : vector<1x16xf32>
    %c0_30 = arith.constant 0 : index
    %c0_31 = arith.constant 0 : index
    %64 = memref.load %arg5[%c0_30, %c0_31] : memref<4x3xf32, #tpu.memory_space<smem>>
    %65 = vector.broadcast %64 : f32 to vector<1x16xf32>
    %66 = arith.mulf %5, %65 : vector<1x16xf32>
    %c0_32 = arith.constant 0 : index
    %c1_33 = arith.constant 1 : index
    %67 = memref.load %arg5[%c0_32, %c1_33] : memref<4x3xf32, #tpu.memory_space<smem>>
    %68 = vector.broadcast %67 : f32 to vector<1x16xf32>
    %69 = arith.mulf %6, %68 : vector<1x16xf32>
    %70 = arith.addf %66, %69 : vector<1x16xf32>
    %c0_34 = arith.constant 0 : index
    %c2_35 = arith.constant 2 : index
    %71 = memref.load %arg5[%c0_34, %c2_35] : memref<4x3xf32, #tpu.memory_space<smem>>
    %72 = vector.broadcast %71 : f32 to vector<1x16xf32>
    %73 = arith.mulf %7, %72 : vector<1x16xf32>
    %74 = arith.addf %70, %73 : vector<1x16xf32>
    %c0_36 = arith.constant 0 : index
    %75 = memref.load %arg6[%c0_36] : memref<4xf32, #tpu.memory_space<smem>>
    %76 = vector.broadcast %75 : f32 to vector<1x16xf32>
    %77 = arith.addf %74, %76 : vector<1x16xf32>
    %c1_37 = arith.constant 1 : index
    %c0_38 = arith.constant 0 : index
    %78 = memref.load %arg5[%c1_37, %c0_38] : memref<4x3xf32, #tpu.memory_space<smem>>
    %79 = vector.broadcast %78 : f32 to vector<1x16xf32>
    %80 = arith.mulf %5, %79 : vector<1x16xf32>
    %c1_39 = arith.constant 1 : index
    %c1_40 = arith.constant 1 : index
    %81 = memref.load %arg5[%c1_39, %c1_40] : memref<4x3xf32, #tpu.memory_space<smem>>
    %82 = vector.broadcast %81 : f32 to vector<1x16xf32>
    %83 = arith.mulf %6, %82 : vector<1x16xf32>
    %84 = arith.addf %80, %83 : vector<1x16xf32>
    %c1_41 = arith.constant 1 : index
    %c2_42 = arith.constant 2 : index
    %85 = memref.load %arg5[%c1_41, %c2_42] : memref<4x3xf32, #tpu.memory_space<smem>>
    %86 = vector.broadcast %85 : f32 to vector<1x16xf32>
    %87 = arith.mulf %7, %86 : vector<1x16xf32>
    %88 = arith.addf %84, %87 : vector<1x16xf32>
    %c1_43 = arith.constant 1 : index
    %89 = memref.load %arg6[%c1_43] : memref<4xf32, #tpu.memory_space<smem>>
    %90 = vector.broadcast %89 : f32 to vector<1x16xf32>
    %91 = arith.addf %88, %90 : vector<1x16xf32>
    %c2_44 = arith.constant 2 : index
    %c0_45 = arith.constant 0 : index
    %92 = memref.load %arg5[%c2_44, %c0_45] : memref<4x3xf32, #tpu.memory_space<smem>>
    %93 = vector.broadcast %92 : f32 to vector<1x16xf32>
    %94 = arith.mulf %5, %93 : vector<1x16xf32>
    %c2_46 = arith.constant 2 : index
    %c1_47 = arith.constant 1 : index
    %95 = memref.load %arg5[%c2_46, %c1_47] : memref<4x3xf32, #tpu.memory_space<smem>>
    %96 = vector.broadcast %95 : f32 to vector<1x16xf32>
    %97 = arith.mulf %6, %96 : vector<1x16xf32>
    %98 = arith.addf %94, %97 : vector<1x16xf32>
    %c2_48 = arith.constant 2 : index
    %c2_49 = arith.constant 2 : index
    %99 = memref.load %arg5[%c2_48, %c2_49] : memref<4x3xf32, #tpu.memory_space<smem>>
    %100 = vector.broadcast %99 : f32 to vector<1x16xf32>
    %101 = arith.mulf %7, %100 : vector<1x16xf32>
    %102 = arith.addf %98, %101 : vector<1x16xf32>
    %c2_50 = arith.constant 2 : index
    %103 = memref.load %arg6[%c2_50] : memref<4xf32, #tpu.memory_space<smem>>
    %104 = vector.broadcast %103 : f32 to vector<1x16xf32>
    %105 = arith.addf %102, %104 : vector<1x16xf32>
    %c3_51 = arith.constant 3 : index
    %c0_52 = arith.constant 0 : index
    %106 = memref.load %arg5[%c3_51, %c0_52] : memref<4x3xf32, #tpu.memory_space<smem>>
    %107 = vector.broadcast %106 : f32 to vector<1x16xf32>
    %108 = arith.mulf %5, %107 : vector<1x16xf32>
    %c3_53 = arith.constant 3 : index
    %c1_54 = arith.constant 1 : index
    %109 = memref.load %arg5[%c3_53, %c1_54] : memref<4x3xf32, #tpu.memory_space<smem>>
    %110 = vector.broadcast %109 : f32 to vector<1x16xf32>
    %111 = arith.mulf %6, %110 : vector<1x16xf32>
    %112 = arith.addf %108, %111 : vector<1x16xf32>
    %c3_55 = arith.constant 3 : index
    %c2_56 = arith.constant 2 : index
    %113 = memref.load %arg5[%c3_55, %c2_56] : memref<4x3xf32, #tpu.memory_space<smem>>
    %114 = vector.broadcast %113 : f32 to vector<1x16xf32>
    %115 = arith.mulf %7, %114 : vector<1x16xf32>
    %116 = arith.addf %112, %115 : vector<1x16xf32>
    %c3_57 = arith.constant 3 : index
    %117 = memref.load %arg6[%c3_57] : memref<4xf32, #tpu.memory_space<smem>>
    %118 = vector.broadcast %117 : f32 to vector<1x16xf32>
    %119 = arith.addf %116, %118 : vector<1x16xf32>
    %c0_58 = arith.constant 0 : index
    %c0_59 = arith.constant 0 : index
    %120 = memref.load %arg1[%c0_58, %c0_59] : memref<3x3xf32, #tpu.memory_space<smem>>
    %121 = vector.broadcast %120 : f32 to vector<1x16xf32>
    %122 = arith.mulf %5, %121 : vector<1x16xf32>
    %c0_60 = arith.constant 0 : index
    %c1_61 = arith.constant 1 : index
    %123 = memref.load %arg1[%c0_60, %c1_61] : memref<3x3xf32, #tpu.memory_space<smem>>
    %124 = vector.broadcast %123 : f32 to vector<1x16xf32>
    %125 = arith.mulf %6, %124 : vector<1x16xf32>
    %126 = arith.addf %122, %125 : vector<1x16xf32>
    %c0_62 = arith.constant 0 : index
    %c2_63 = arith.constant 2 : index
    %127 = memref.load %arg1[%c0_62, %c2_63] : memref<3x3xf32, #tpu.memory_space<smem>>
    %128 = vector.broadcast %127 : f32 to vector<1x16xf32>
    %129 = arith.mulf %7, %128 : vector<1x16xf32>
    %130 = arith.addf %126, %129 : vector<1x16xf32>
    %c0_64 = arith.constant 0 : index
    %131 = memref.load %arg2[%c0_64] : memref<3xf32, #tpu.memory_space<smem>>
    %132 = vector.broadcast %131 : f32 to vector<1x16xf32>
    %133 = arith.addf %130, %132 : vector<1x16xf32>
    %c1_65 = arith.constant 1 : index
    %c0_66 = arith.constant 0 : index
    %134 = memref.load %arg1[%c1_65, %c0_66] : memref<3x3xf32, #tpu.memory_space<smem>>
    %135 = vector.broadcast %134 : f32 to vector<1x16xf32>
    %136 = arith.mulf %5, %135 : vector<1x16xf32>
    %c1_67 = arith.constant 1 : index
    %c1_68 = arith.constant 1 : index
    %137 = memref.load %arg1[%c1_67, %c1_68] : memref<3x3xf32, #tpu.memory_space<smem>>
    %138 = vector.broadcast %137 : f32 to vector<1x16xf32>
    %139 = arith.mulf %6, %138 : vector<1x16xf32>
    %140 = arith.addf %136, %139 : vector<1x16xf32>
    %c1_69 = arith.constant 1 : index
    %c2_70 = arith.constant 2 : index
    %141 = memref.load %arg1[%c1_69, %c2_70] : memref<3x3xf32, #tpu.memory_space<smem>>
    %142 = vector.broadcast %141 : f32 to vector<1x16xf32>
    %143 = arith.mulf %7, %142 : vector<1x16xf32>
    %144 = arith.addf %140, %143 : vector<1x16xf32>
    %c1_71 = arith.constant 1 : index
    %145 = memref.load %arg2[%c1_71] : memref<3xf32, #tpu.memory_space<smem>>
    %146 = vector.broadcast %145 : f32 to vector<1x16xf32>
    %147 = arith.addf %144, %146 : vector<1x16xf32>
    %c2_72 = arith.constant 2 : index
    %c0_73 = arith.constant 0 : index
    %148 = memref.load %arg1[%c2_72, %c0_73] : memref<3x3xf32, #tpu.memory_space<smem>>
    %149 = vector.broadcast %148 : f32 to vector<1x16xf32>
    %150 = arith.mulf %5, %149 : vector<1x16xf32>
    %c2_74 = arith.constant 2 : index
    %c1_75 = arith.constant 1 : index
    %151 = memref.load %arg1[%c2_74, %c1_75] : memref<3x3xf32, #tpu.memory_space<smem>>
    %152 = vector.broadcast %151 : f32 to vector<1x16xf32>
    %153 = arith.mulf %6, %152 : vector<1x16xf32>
    %154 = arith.addf %150, %153 : vector<1x16xf32>
    %c2_76 = arith.constant 2 : index
    %c2_77 = arith.constant 2 : index
    %155 = memref.load %arg1[%c2_76, %c2_77] : memref<3x3xf32, #tpu.memory_space<smem>>
    %156 = vector.broadcast %155 : f32 to vector<1x16xf32>
    %157 = arith.mulf %7, %156 : vector<1x16xf32>
    %158 = arith.addf %154, %157 : vector<1x16xf32>
    %c2_78 = arith.constant 2 : index
    %159 = memref.load %arg2[%c2_78] : memref<3xf32, #tpu.memory_space<smem>>
    %160 = vector.broadcast %159 : f32 to vector<1x16xf32>
    %161 = arith.addf %158, %160 : vector<1x16xf32>
    %cst_79 = arith.constant dense<0.000000e+00> : vector<1xf32>
    %162 = vector.multi_reduction <add>, %77, %cst_79 [1] : vector<1x16xf32> to vector<1xf32>
    %163 = vector.shape_cast %162 : vector<1xf32> to vector<1x1xf32>
    %164 = vector.broadcast %163 : vector<1x1xf32> to vector<1x16xf32>
    %165 = arith.mulf %21, %164 : vector<1x16xf32>
    %cst_80 = arith.constant dense<0.000000e+00> : vector<1xf32>
    %166 = vector.multi_reduction <add>, %91, %cst_80 [1] : vector<1x16xf32> to vector<1xf32>
    %167 = vector.shape_cast %166 : vector<1xf32> to vector<1x1xf32>
    %168 = vector.broadcast %167 : vector<1x1xf32> to vector<1x16xf32>
    %169 = arith.mulf %35, %168 : vector<1x16xf32>
    %170 = arith.addf %165, %169 : vector<1x16xf32>
    %cst_81 = arith.constant dense<0.000000e+00> : vector<1xf32>
    %171 = vector.multi_reduction <add>, %105, %cst_81 [1] : vector<1x16xf32> to vector<1xf32>
    %172 = vector.shape_cast %171 : vector<1xf32> to vector<1x1xf32>
    %173 = vector.broadcast %172 : vector<1x1xf32> to vector<1x16xf32>
    %174 = arith.mulf %49, %173 : vector<1x16xf32>
    %175 = arith.addf %170, %174 : vector<1x16xf32>
    %cst_82 = arith.constant dense<0.000000e+00> : vector<1xf32>
    %176 = vector.multi_reduction <add>, %119, %cst_82 [1] : vector<1x16xf32> to vector<1xf32>
    %177 = vector.shape_cast %176 : vector<1xf32> to vector<1x1xf32>
    %178 = vector.broadcast %177 : vector<1x1xf32> to vector<1x16xf32>
    %179 = arith.mulf %63, %178 : vector<1x16xf32>
    %180 = arith.addf %175, %179 : vector<1x16xf32>
    %181 = vector.broadcast %1 : f32 to vector<1x16xf32>
    %182 = arith.mulf %180, %181 : vector<1x16xf32>
    %cst_83 = arith.constant dense<0xFF800000> : vector<1xf32>
    %183 = vector.multi_reduction <maximumf>, %182, %cst_83 [1] : vector<1x16xf32> to vector<1xf32>
    %184 = vector.shape_cast %183 : vector<1xf32> to vector<1x1xf32>
    %185 = vector.broadcast %184 : vector<1x1xf32> to vector<1x16xf32>
    %186 = arith.subf %182, %185 : vector<1x16xf32>
    %187 = math.exp %186 : vector<1x16xf32>
    %cst_84 = arith.constant dense<0.000000e+00> : vector<1xf32>
    %188 = vector.multi_reduction <add>, %187, %cst_84 [1] : vector<1x16xf32> to vector<1xf32>
    %189 = vector.shape_cast %188 : vector<1xf32> to vector<1x1xf32>
    %190 = vector.broadcast %189 : vector<1x1xf32> to vector<1x16xf32>
    %191 = arith.divf %187, %190 : vector<1x16xf32>
    %192 = arith.mulf %133, %191 : vector<1x16xf32>
    %cst_85 = arith.constant dense<0.000000e+00> : vector<1xf32>
    %193 = vector.multi_reduction <add>, %192, %cst_85 [1] : vector<1x16xf32> to vector<1xf32>
    %194 = vector.shape_cast %193 : vector<1xf32> to vector<1x1xf32>
    %195 = arith.mulf %147, %191 : vector<1x16xf32>
    %cst_86 = arith.constant dense<0.000000e+00> : vector<1xf32>
    %196 = vector.multi_reduction <add>, %195, %cst_86 [1] : vector<1x16xf32> to vector<1xf32>
    %197 = vector.shape_cast %196 : vector<1xf32> to vector<1x1xf32>
    %198 = arith.mulf %161, %191 : vector<1x16xf32>
    %cst_87 = arith.constant dense<0.000000e+00> : vector<1xf32>
    %199 = vector.multi_reduction <add>, %198, %cst_87 [1] : vector<1x16xf32> to vector<1xf32>
    %200 = vector.shape_cast %199 : vector<1xf32> to vector<1x1xf32>
    %201 = tpu.concatenate %194, %197, %200 in 0 : vector<1x1xf32>, vector<1x1xf32>, vector<1x1xf32> -> vector<3x1xf32>
    %202 = tpu.concatenate %194, %197, %200 in 1 : vector<1x1xf32>, vector<1x1xf32>, vector<1x1xf32> -> vector<1x3xf32>
    %203 = vector.broadcast %201 : vector<3x1xf32> to vector<3x128xf32>
    %204 = arith.subf %3, %203 : vector<3x128xf32>
    %c0_88 = arith.constant 0 : index
    %c0_89 = arith.constant 0 : index
    %c0_90 = arith.constant 0 : index
    %205 = vector.load %arg10[%c0_88, %c0_89, %c0_90] : memref<2x3x128xf32, #tpu.memory_space<vmem>>, vector<1x3x128xf32>
    %206 = vector.shape_cast %205 : vector<1x3x128xf32> to vector<3x128xf32>
    %207 = vector.shape_cast %204 : vector<3x128xf32> to vector<1x3x128xf32>
    tpu.vector_store %arg10[%c0_88, %c0_89, %c0_90], %207 {strides = array<i32>} : memref<2x3x128xf32, #tpu.memory_space<vmem>>, vector<1x3x128xf32>,
    %c0_91 = arith.constant 0 : index
    %c0_92 = arith.constant 0 : index
    %c0_93 = arith.constant 0 : index
    %208 = vector.load %arg11[%c0_91, %c0_92, %c0_93] : memref<2x1x16xf32, #tpu.memory_space<vmem>>, vector<1x1x16xf32>
    %209 = vector.shape_cast %208 : vector<1x1x16xf32> to vector<1x16xf32>
    %210 = vector.shape_cast %191 : vector<1x16xf32> to vector<1x1x16xf32>
    tpu.vector_store %arg11[%c0_91, %c0_92, %c0_93], %210 {strides = array<i32>} : memref<2x1x16xf32, #tpu.memory_space<vmem>>, vector<1x1x16xf32>,
    %c0_94 = arith.constant 0 : index
    %c0_95 = arith.constant 0 : index
    %c0_96 = arith.constant 0 : index
    %211 = vector.load %arg12[%c0_94, %c0_95, %c0_96] : memref<2x1x3xf32, #tpu.memory_space<vmem>>, vector<1x1x3xf32>
    %212 = vector.shape_cast %211 : vector<1x1x3xf32> to vector<1x3xf32>
    %213 = vector.shape_cast %202 : vector<1x3xf32> to vector<1x1x3xf32>
    tpu.vector_store %arg12[%c0_94, %c0_95, %c0_96], %213 {strides = array<i32>} : memref<2x1x3xf32, #tpu.memory_space<vmem>>, vector<1x1x3xf32>,
    %c1_97 = arith.constant 1 : index
    %c0_98 = arith.constant 0 : index
    %c0_99 = arith.constant 0 : index
    %214 = vector.load %arg9[%c1_97, %c0_98, %c0_99] : memref<2x3x128xf32, #tpu.memory_space<vmem>>, vector<1x3x128xf32>
    %215 = vector.shape_cast %214 : vector<1x3x128xf32> to vector<3x128xf32>
    %cst_100 = arith.constant dense<0.000000e+00> : vector<3x16xf32>
    %216 = tpu.matmul %215, %0, %cst_100 {dimension_numbers = #tpu.dot_dimension_numbers<[1], [0], [0], [1], [0, 0, 1, 1], [], []>} : vector<3x128xf32>, vector<128x16xf32>, vector<3x16xf32> -> vector<3x16xf32>
    %217 = vector.extract_strided_slice %216 {offsets = [0, 0], sizes = [1, 16], strides = [1, 1]} : vector<3x16xf32> to vector<1x16xf32>
    %218 = vector.extract_strided_slice %216 {offsets = [1, 0], sizes = [1, 16], strides = [1, 1]} : vector<3x16xf32> to vector<1x16xf32>
    %219 = vector.extract_strided_slice %216 {offsets = [2, 0], sizes = [1, 16], strides = [1, 1]} : vector<3x16xf32> to vector<1x16xf32>
    %c0_101 = arith.constant 0 : index
    %c0_102 = arith.constant 0 : index
    %220 = memref.load %arg3[%c0_101, %c0_102] : memref<4x3xf32, #tpu.memory_space<smem>>
    %221 = vector.broadcast %220 : f32 to vector<1x16xf32>
    %222 = arith.mulf %217, %221 : vector<1x16xf32>
    %c0_103 = arith.constant 0 : index
    %c1_104 = arith.constant 1 : index
    %223 = memref.load %arg3[%c0_103, %c1_104] : memref<4x3xf32, #tpu.memory_space<smem>>
    %224 = vector.broadcast %223 : f32 to vector<1x16xf32>
    %225 = arith.mulf %218, %224 : vector<1x16xf32>
    %226 = arith.addf %222, %225 : vector<1x16xf32>
    %c0_105 = arith.constant 0 : index
    %c2_106 = arith.constant 2 : index
    %227 = memref.load %arg3[%c0_105, %c2_106] : memref<4x3xf32, #tpu.memory_space<smem>>
    %228 = vector.broadcast %227 : f32 to vector<1x16xf32>
    %229 = arith.mulf %219, %228 : vector<1x16xf32>
    %230 = arith.addf %226, %229 : vector<1x16xf32>
    %c0_107 = arith.constant 0 : index
    %231 = memref.load %arg4[%c0_107] : memref<4xf32, #tpu.memory_space<smem>>
    %232 = vector.broadcast %231 : f32 to vector<1x16xf32>
    %233 = arith.addf %230, %232 : vector<1x16xf32>
    %c1_108 = arith.constant 1 : index
    %c0_109 = arith.constant 0 : index
    %234 = memref.load %arg3[%c1_108, %c0_109] : memref<4x3xf32, #tpu.memory_space<smem>>
    %235 = vector.broadcast %234 : f32 to vector<1x16xf32>
    %236 = arith.mulf %217, %235 : vector<1x16xf32>
    %c1_110 = arith.constant 1 : index
    %c1_111 = arith.constant 1 : index
    %237 = memref.load %arg3[%c1_110, %c1_111] : memref<4x3xf32, #tpu.memory_space<smem>>
    %238 = vector.broadcast %237 : f32 to vector<1x16xf32>
    %239 = arith.mulf %218, %238 : vector<1x16xf32>
    %240 = arith.addf %236, %239 : vector<1x16xf32>
    %c1_112 = arith.constant 1 : index
    %c2_113 = arith.constant 2 : index
    %241 = memref.load %arg3[%c1_112, %c2_113] : memref<4x3xf32, #tpu.memory_space<smem>>
    %242 = vector.broadcast %241 : f32 to vector<1x16xf32>
    %243 = arith.mulf %219, %242 : vector<1x16xf32>
    %244 = arith.addf %240, %243 : vector<1x16xf32>
    %c1_114 = arith.constant 1 : index
    %245 = memref.load %arg4[%c1_114] : memref<4xf32, #tpu.memory_space<smem>>
    %246 = vector.broadcast %245 : f32 to vector<1x16xf32>
    %247 = arith.addf %244, %246 : vector<1x16xf32>
    %c2_115 = arith.constant 2 : index
    %c0_116 = arith.constant 0 : index
    %248 = memref.load %arg3[%c2_115, %c0_116] : memref<4x3xf32, #tpu.memory_space<smem>>
    %249 = vector.broadcast %248 : f32 to vector<1x16xf32>
    %250 = arith.mulf %217, %249 : vector<1x16xf32>
    %c2_117 = arith.constant 2 : index
    %c1_118 = arith.constant 1 : index
    %251 = memref.load %arg3[%c2_117, %c1_118] : memref<4x3xf32, #tpu.memory_space<smem>>
    %252 = vector.broadcast %251 : f32 to vector<1x16xf32>
    %253 = arith.mulf %218, %252 : vector<1x16xf32>
    %254 = arith.addf %250, %253 : vector<1x16xf32>
    %c2_119 = arith.constant 2 : index
    %c2_120 = arith.constant 2 : index
    %255 = memref.load %arg3[%c2_119, %c2_120] : memref<4x3xf32, #tpu.memory_space<smem>>
    %256 = vector.broadcast %255 : f32 to vector<1x16xf32>
    %257 = arith.mulf %219, %256 : vector<1x16xf32>
    %258 = arith.addf %254, %257 : vector<1x16xf32>
    %c2_121 = arith.constant 2 : index
    %259 = memref.load %arg4[%c2_121] : memref<4xf32, #tpu.memory_space<smem>>
    %260 = vector.broadcast %259 : f32 to vector<1x16xf32>
    %261 = arith.addf %258, %260 : vector<1x16xf32>
    %c3_122 = arith.constant 3 : index
    %c0_123 = arith.constant 0 : index
    %262 = memref.load %arg3[%c3_122, %c0_123] : memref<4x3xf32, #tpu.memory_space<smem>>
    %263 = vector.broadcast %262 : f32 to vector<1x16xf32>
    %264 = arith.mulf %217, %263 : vector<1x16xf32>
    %c3_124 = arith.constant 3 : index
    %c1_125 = arith.constant 1 : index
    %265 = memref.load %arg3[%c3_124, %c1_125] : memref<4x3xf32, #tpu.memory_space<smem>>
    %266 = vector.broadcast %265 : f32 to vector<1x16xf32>
    %267 = arith.mulf %218, %266 : vector<1x16xf32>
    %268 = arith.addf %264, %267 : vector<1x16xf32>
    %c3_126 = arith.constant 3 : index
    %c2_127 = arith.constant 2 : index
    %269 = memref.load %arg3[%c3_126, %c2_127] : memref<4x3xf32, #tpu.memory_space<smem>>
    %270 = vector.broadcast %269 : f32 to vector<1x16xf32>
    %271 = arith.mulf %219, %270 : vector<1x16xf32>
    %272 = arith.addf %268, %271 : vector<1x16xf32>
    %c3_128 = arith.constant 3 : index
    %273 = memref.load %arg4[%c3_128] : memref<4xf32, #tpu.memory_space<smem>>
    %274 = vector.broadcast %273 : f32 to vector<1x16xf32>
    %275 = arith.addf %272, %274 : vector<1x16xf32>
    %c0_129 = arith.constant 0 : index
    %c0_130 = arith.constant 0 : index
    %276 = memref.load %arg5[%c0_129, %c0_130] : memref<4x3xf32, #tpu.memory_space<smem>>
    %277 = vector.broadcast %276 : f32 to vector<1x16xf32>
    %278 = arith.mulf %217, %277 : vector<1x16xf32>
    %c0_131 = arith.constant 0 : index
    %c1_132 = arith.constant 1 : index
    %279 = memref.load %arg5[%c0_131, %c1_132] : memref<4x3xf32, #tpu.memory_space<smem>>
    %280 = vector.broadcast %279 : f32 to vector<1x16xf32>
    %281 = arith.mulf %218, %280 : vector<1x16xf32>
    %282 = arith.addf %278, %281 : vector<1x16xf32>
    %c0_133 = arith.constant 0 : index
    %c2_134 = arith.constant 2 : index
    %283 = memref.load %arg5[%c0_133, %c2_134] : memref<4x3xf32, #tpu.memory_space<smem>>
    %284 = vector.broadcast %283 : f32 to vector<1x16xf32>
    %285 = arith.mulf %219, %284 : vector<1x16xf32>
    %286 = arith.addf %282, %285 : vector<1x16xf32>
    %c0_135 = arith.constant 0 : index
    %287 = memref.load %arg6[%c0_135] : memref<4xf32, #tpu.memory_space<smem>>
    %288 = vector.broadcast %287 : f32 to vector<1x16xf32>
    %289 = arith.addf %286, %288 : vector<1x16xf32>
    %c1_136 = arith.constant 1 : index
    %c0_137 = arith.constant 0 : index
    %290 = memref.load %arg5[%c1_136, %c0_137] : memref<4x3xf32, #tpu.memory_space<smem>>
    %291 = vector.broadcast %290 : f32 to vector<1x16xf32>
    %292 = arith.mulf %217, %291 : vector<1x16xf32>
    %c1_138 = arith.constant 1 : index
    %c1_139 = arith.constant 1 : index
    %293 = memref.load %arg5[%c1_138, %c1_139] : memref<4x3xf32, #tpu.memory_space<smem>>
    %294 = vector.broadcast %293 : f32 to vector<1x16xf32>
    %295 = arith.mulf %218, %294 : vector<1x16xf32>
    %296 = arith.addf %292, %295 : vector<1x16xf32>
    %c1_140 = arith.constant 1 : index
    %c2_141 = arith.constant 2 : index
    %297 = memref.load %arg5[%c1_140, %c2_141] : memref<4x3xf32, #tpu.memory_space<smem>>
    %298 = vector.broadcast %297 : f32 to vector<1x16xf32>
    %299 = arith.mulf %219, %298 : vector<1x16xf32>
    %300 = arith.addf %296, %299 : vector<1x16xf32>
    %c1_142 = arith.constant 1 : index
    %301 = memref.load %arg6[%c1_142] : memref<4xf32, #tpu.memory_space<smem>>
    %302 = vector.broadcast %301 : f32 to vector<1x16xf32>
    %303 = arith.addf %300, %302 : vector<1x16xf32>
    %c2_143 = arith.constant 2 : index
    %c0_144 = arith.constant 0 : index
    %304 = memref.load %arg5[%c2_143, %c0_144] : memref<4x3xf32, #tpu.memory_space<smem>>
    %305 = vector.broadcast %304 : f32 to vector<1x16xf32>
    %306 = arith.mulf %217, %305 : vector<1x16xf32>
    %c2_145 = arith.constant 2 : index
    %c1_146 = arith.constant 1 : index
    %307 = memref.load %arg5[%c2_145, %c1_146] : memref<4x3xf32, #tpu.memory_space<smem>>
    %308 = vector.broadcast %307 : f32 to vector<1x16xf32>
    %309 = arith.mulf %218, %308 : vector<1x16xf32>
    %310 = arith.addf %306, %309 : vector<1x16xf32>
    %c2_147 = arith.constant 2 : index
    %c2_148 = arith.constant 2 : index
    %311 = memref.load %arg5[%c2_147, %c2_148] : memref<4x3xf32, #tpu.memory_space<smem>>
    %312 = vector.broadcast %311 : f32 to vector<1x16xf32>
    %313 = arith.mulf %219, %312 : vector<1x16xf32>
    %314 = arith.addf %310, %313 : vector<1x16xf32>
    %c2_149 = arith.constant 2 : index
    %315 = memref.load %arg6[%c2_149] : memref<4xf32, #tpu.memory_space<smem>>
    %316 = vector.broadcast %315 : f32 to vector<1x16xf32>
    %317 = arith.addf %314, %316 : vector<1x16xf32>
    %c3_150 = arith.constant 3 : index
    %c0_151 = arith.constant 0 : index
    %318 = memref.load %arg5[%c3_150, %c0_151] : memref<4x3xf32, #tpu.memory_space<smem>>
    %319 = vector.broadcast %318 : f32 to vector<1x16xf32>
    %320 = arith.mulf %217, %319 : vector<1x16xf32>
    %c3_152 = arith.constant 3 : index
    %c1_153 = arith.constant 1 : index
    %321 = memref.load %arg5[%c3_152, %c1_153] : memref<4x3xf32, #tpu.memory_space<smem>>
    %322 = vector.broadcast %321 : f32 to vector<1x16xf32>
    %323 = arith.mulf %218, %322 : vector<1x16xf32>
    %324 = arith.addf %320, %323 : vector<1x16xf32>
    %c3_154 = arith.constant 3 : index
    %c2_155 = arith.constant 2 : index
    %325 = memref.load %arg5[%c3_154, %c2_155] : memref<4x3xf32, #tpu.memory_space<smem>>
    %326 = vector.broadcast %325 : f32 to vector<1x16xf32>
    %327 = arith.mulf %219, %326 : vector<1x16xf32>
    %328 = arith.addf %324, %327 : vector<1x16xf32>
    %c3_156 = arith.constant 3 : index
    %329 = memref.load %arg6[%c3_156] : memref<4xf32, #tpu.memory_space<smem>>
    %330 = vector.broadcast %329 : f32 to vector<1x16xf32>
    %331 = arith.addf %328, %330 : vector<1x16xf32>
    %c0_157 = arith.constant 0 : index
    %c0_158 = arith.constant 0 : index
    %332 = memref.load %arg1[%c0_157, %c0_158] : memref<3x3xf32, #tpu.memory_space<smem>>
    %333 = vector.broadcast %332 : f32 to vector<1x16xf32>
    %334 = arith.mulf %217, %333 : vector<1x16xf32>
    %c0_159 = arith.constant 0 : index
    %c1_160 = arith.constant 1 : index
    %335 = memref.load %arg1[%c0_159, %c1_160] : memref<3x3xf32, #tpu.memory_space<smem>>
    %336 = vector.broadcast %335 : f32 to vector<1x16xf32>
    %337 = arith.mulf %218, %336 : vector<1x16xf32>
    %338 = arith.addf %334, %337 : vector<1x16xf32>
    %c0_161 = arith.constant 0 : index
    %c2_162 = arith.constant 2 : index
    %339 = memref.load %arg1[%c0_161, %c2_162] : memref<3x3xf32, #tpu.memory_space<smem>>
    %340 = vector.broadcast %339 : f32 to vector<1x16xf32>
    %341 = arith.mulf %219, %340 : vector<1x16xf32>
    %342 = arith.addf %338, %341 : vector<1x16xf32>
    %c0_163 = arith.constant 0 : index
    %343 = memref.load %arg2[%c0_163] : memref<3xf32, #tpu.memory_space<smem>>
    %344 = vector.broadcast %343 : f32 to vector<1x16xf32>
    %345 = arith.addf %342, %344 : vector<1x16xf32>
    %c1_164 = arith.constant 1 : index
    %c0_165 = arith.constant 0 : index
    %346 = memref.load %arg1[%c1_164, %c0_165] : memref<3x3xf32, #tpu.memory_space<smem>>
    %347 = vector.broadcast %346 : f32 to vector<1x16xf32>
    %348 = arith.mulf %217, %347 : vector<1x16xf32>
    %c1_166 = arith.constant 1 : index
    %c1_167 = arith.constant 1 : index
    %349 = memref.load %arg1[%c1_166, %c1_167] : memref<3x3xf32, #tpu.memory_space<smem>>
    %350 = vector.broadcast %349 : f32 to vector<1x16xf32>
    %351 = arith.mulf %218, %350 : vector<1x16xf32>
    %352 = arith.addf %348, %351 : vector<1x16xf32>
    %c1_168 = arith.constant 1 : index
    %c2_169 = arith.constant 2 : index
    %353 = memref.load %arg1[%c1_168, %c2_169] : memref<3x3xf32, #tpu.memory_space<smem>>
    %354 = vector.broadcast %353 : f32 to vector<1x16xf32>
    %355 = arith.mulf %219, %354 : vector<1x16xf32>
    %356 = arith.addf %352, %355 : vector<1x16xf32>
    %c1_170 = arith.constant 1 : index
    %357 = memref.load %arg2[%c1_170] : memref<3xf32, #tpu.memory_space<smem>>
    %358 = vector.broadcast %357 : f32 to vector<1x16xf32>
    %359 = arith.addf %356, %358 : vector<1x16xf32>
    %c2_171 = arith.constant 2 : index
    %c0_172 = arith.constant 0 : index
    %360 = memref.load %arg1[%c2_171, %c0_172] : memref<3x3xf32, #tpu.memory_space<smem>>
    %361 = vector.broadcast %360 : f32 to vector<1x16xf32>
    %362 = arith.mulf %217, %361 : vector<1x16xf32>
    %c2_173 = arith.constant 2 : index
    %c1_174 = arith.constant 1 : index
    %363 = memref.load %arg1[%c2_173, %c1_174] : memref<3x3xf32, #tpu.memory_space<smem>>
    %364 = vector.broadcast %363 : f32 to vector<1x16xf32>
    %365 = arith.mulf %218, %364 : vector<1x16xf32>
    %366 = arith.addf %362, %365 : vector<1x16xf32>
    %c2_175 = arith.constant 2 : index
    %c2_176 = arith.constant 2 : index
    %367 = memref.load %arg1[%c2_175, %c2_176] : memref<3x3xf32, #tpu.memory_space<smem>>
    %368 = vector.broadcast %367 : f32 to vector<1x16xf32>
    %369 = arith.mulf %219, %368 : vector<1x16xf32>
    %370 = arith.addf %366, %369 : vector<1x16xf32>
    %c2_177 = arith.constant 2 : index
    %371 = memref.load %arg2[%c2_177] : memref<3xf32, #tpu.memory_space<smem>>
    %372 = vector.broadcast %371 : f32 to vector<1x16xf32>
    %373 = arith.addf %370, %372 : vector<1x16xf32>
    %cst_178 = arith.constant dense<0.000000e+00> : vector<1xf32>
    %374 = vector.multi_reduction <add>, %289, %cst_178 [1] : vector<1x16xf32> to vector<1xf32>
    %375 = vector.shape_cast %374 : vector<1xf32> to vector<1x1xf32>
    %376 = vector.broadcast %375 : vector<1x1xf32> to vector<1x16xf32>
    %377 = arith.mulf %233, %376 : vector<1x16xf32>
    %cst_179 = arith.constant dense<0.000000e+00> : vector<1xf32>
    %378 = vector.multi_reduction <add>, %303, %cst_179 [1] : vector<1x16xf32> to vector<1xf32>
    %379 = vector.shape_cast %378 : vector<1xf32> to vector<1x1xf32>
    %380 = vector.broadcast %379 : vector<1x1xf32> to vector<1x16xf32>
    %381 = arith.mulf %247, %380 : vector<1x16xf32>
    %382 = arith.addf %377, %381 : vector<1x16xf32>
    %cst_180 = arith.constant dense<0.000000e+00> : vector<1xf32>
    %383 = vector.multi_reduction <add>, %317, %cst_180 [1] : vector<1x16xf32> to vector<1xf32>
    %384 = vector.shape_cast %383 : vector<1xf32> to vector<1x1xf32>
    %385 = vector.broadcast %384 : vector<1x1xf32> to vector<1x16xf32>
    %386 = arith.mulf %261, %385 : vector<1x16xf32>
    %387 = arith.addf %382, %386 : vector<1x16xf32>
    %cst_181 = arith.constant dense<0.000000e+00> : vector<1xf32>
    %388 = vector.multi_reduction <add>, %331, %cst_181 [1] : vector<1x16xf32> to vector<1xf32>
    %389 = vector.shape_cast %388 : vector<1xf32> to vector<1x1xf32>
    %390 = vector.broadcast %389 : vector<1x1xf32> to vector<1x16xf32>
    %391 = arith.mulf %275, %390 : vector<1x16xf32>
    %392 = arith.addf %387, %391 : vector<1x16xf32>
    %393 = vector.broadcast %1 : f32 to vector<1x16xf32>
    %394 = arith.mulf %392, %393 : vector<1x16xf32>
    %cst_182 = arith.constant dense<0xFF800000> : vector<1xf32>
    %395 = vector.multi_reduction <maximumf>, %394, %cst_182 [1] : vector<1x16xf32> to vector<1xf32>
    %396 = vector.shape_cast %395 : vector<1xf32> to vector<1x1xf32>
    %397 = vector.broadcast %396 : vector<1x1xf32> to vector<1x16xf32>
    %398 = arith.subf %394, %397 : vector<1x16xf32>
    %399 = math.exp %398 : vector<1x16xf32>
    %cst_183 = arith.constant dense<0.000000e+00> : vector<1xf32>
    %400 = vector.multi_reduction <add>, %399, %cst_183 [1] : vector<1x16xf32> to vector<1xf32>
    %401 = vector.shape_cast %400 : vector<1xf32> to vector<1x1xf32>
    %402 = vector.broadcast %401 : vector<1x1xf32> to vector<1x16xf32>
    %403 = arith.divf %399, %402 : vector<1x16xf32>
    %404 = arith.mulf %345, %403 : vector<1x16xf32>
    %cst_184 = arith.constant dense<0.000000e+00> : vector<1xf32>
    %405 = vector.multi_reduction <add>, %404, %cst_184 [1] : vector<1x16xf32> to vector<1xf32>
    %406 = vector.shape_cast %405 : vector<1xf32> to vector<1x1xf32>
    %407 = arith.mulf %359, %403 : vector<1x16xf32>
    %cst_185 = arith.constant dense<0.000000e+00> : vector<1xf32>
    %408 = vector.multi_reduction <add>, %407, %cst_185 [1] : vector<1x16xf32> to vector<1xf32>
    %409 = vector.shape_cast %408 : vector<1xf32> to vector<1x1xf32>
    %410 = arith.mulf %373, %403 : vector<1x16xf32>
    %cst_186 = arith.constant dense<0.000000e+00> : vector<1xf32>
    %411 = vector.multi_reduction <add>, %410, %cst_186 [1] : vector<1x16xf32> to vector<1xf32>
    %412 = vector.shape_cast %411 : vector<1xf32> to vector<1x1xf32>
    %413 = tpu.concatenate %406, %409, %412 in 0 : vector<1x1xf32>, vector<1x1xf32>, vector<1x1xf32> -> vector<3x1xf32>
    %414 = tpu.concatenate %406, %409, %412 in 1 : vector<1x1xf32>, vector<1x1xf32>, vector<1x1xf32> -> vector<1x3xf32>
    %415 = vector.broadcast %413 : vector<3x1xf32> to vector<3x128xf32>
    %416 = arith.subf %215, %415 : vector<3x128xf32>
    %c1_187 = arith.constant 1 : index
    %c0_188 = arith.constant 0 : index
    %c0_189 = arith.constant 0 : index
    %417 = vector.load %arg10[%c1_187, %c0_188, %c0_189] : memref<2x3x128xf32, #tpu.memory_space<vmem>>, vector<1x3x128xf32>
    %418 = vector.shape_cast %417 : vector<1x3x128xf32> to vector<3x128xf32>
    %419 = vector.shape_cast %416 : vector<3x128xf32> to vector<1x3x128xf32>
    tpu.vector_store %arg10[%c1_187, %c0_188, %c0_189], %419 {strides = array<i32>} : memref<2x3x128xf32, #tpu.memory_space<vmem>>, vector<1x3x128xf32>,
    %c1_190 = arith.constant 1 : index
    %c0_191 = arith.constant 0 : index
    %c0_192 = arith.constant 0 : index
    %420 = vector.load %arg11[%c1_190, %c0_191, %c0_192] : memref<2x1x16xf32, #tpu.memory_space<vmem>>, vector<1x1x16xf32>
    %421 = vector.shape_cast %420 : vector<1x1x16xf32> to vector<1x16xf32>
    %422 = vector.shape_cast %403 : vector<1x16xf32> to vector<1x1x16xf32>
    tpu.vector_store %arg11[%c1_190, %c0_191, %c0_192], %422 {strides = array<i32>} : memref<2x1x16xf32, #tpu.memory_space<vmem>>, vector<1x1x16xf32>,
    %c1_193 = arith.constant 1 : index
    %c0_194 = arith.constant 0 : index
    %c0_195 = arith.constant 0 : index
    %423 = vector.load %arg12[%c1_193, %c0_194, %c0_195] : memref<2x1x3xf32, #tpu.memory_space<vmem>>, vector<1x1x3xf32>
    %424 = vector.shape_cast %423 : vector<1x1x3xf32> to vector<1x3xf32>
    %425 = vector.shape_cast %414 : vector<1x3xf32> to vector<1x1x3xf32>
    tpu.vector_store %arg12[%c1_193, %c0_194, %c0_195], %425 {strides = array<i32>} : memref<2x1x3xf32, #tpu.memory_space<vmem>>, vector<1x1x3xf32>,
    return
  }
  func.func @transform_0(%arg0: i32, %arg1: memref<3x3xf32, #tpu.memory_space<smem>>, %arg2: memref<3xf32, #tpu.memory_space<smem>>, %arg3: memref<4x3xf32, #tpu.memory_space<smem>>, %arg4: memref<4xf32, #tpu.memory_space<smem>>, %arg5: memref<4x3xf32, #tpu.memory_space<smem>>, %arg6: memref<4xf32, #tpu.memory_space<smem>>, %arg7: memref<1xf32, #tpu.memory_space<smem>>) -> (i32, i32) {
    %c0_i32 = arith.constant 0 : i32
    %c0_i32_0 = arith.constant 0 : i32
    %c0_i32_1 = arith.constant 0 : i32
    return %c0_i32, %c0_i32_0 : i32, i32
  }
  func.func @transform_1(%arg0: i32, %arg1: memref<3x3xf32, #tpu.memory_space<smem>>, %arg2: memref<3xf32, #tpu.memory_space<smem>>, %arg3: memref<4x3xf32, #tpu.memory_space<smem>>, %arg4: memref<4xf32, #tpu.memory_space<smem>>, %arg5: memref<4x3xf32, #tpu.memory_space<smem>>, %arg6: memref<4xf32, #tpu.memory_space<smem>>, %arg7: memref<1xf32, #tpu.memory_space<smem>>) -> (i32, i32, i32) {
    %c0_i32 = arith.constant 0 : i32
    %c0_i32_0 = arith.constant 0 : i32
    %c0_i32_1 = arith.constant 0 : i32
    return %arg0, %c0_i32, %c0_i32_0 : i32, i32, i32
  }
  func.func @transform_2(%arg0: i32, %arg1: memref<3x3xf32, #tpu.memory_space<smem>>, %arg2: memref<3xf32, #tpu.memory_space<smem>>, %arg3: memref<4x3xf32, #tpu.memory_space<smem>>, %arg4: memref<4xf32, #tpu.memory_space<smem>>, %arg5: memref<4x3xf32, #tpu.memory_space<smem>>, %arg6: memref<4xf32, #tpu.memory_space<smem>>, %arg7: memref<1xf32, #tpu.memory_space<smem>>) -> (i32, i32, i32) {
    %c0_i32 = arith.constant 0 : i32
    %c0_i32_0 = arith.constant 0 : i32
    %c0_i32_1 = arith.constant 0 : i32
    return %arg0, %c0_i32, %c0_i32_0 : i32, i32, i32
  }
  func.func @transform_3(%arg0: i32, %arg1: memref<3x3xf32, #tpu.memory_space<smem>>, %arg2: memref<3xf32, #tpu.memory_space<smem>>, %arg3: memref<4x3xf32, #tpu.memory_space<smem>>, %arg4: memref<4xf32, #tpu.memory_space<smem>>, %arg5: memref<4x3xf32, #tpu.memory_space<smem>>, %arg6: memref<4xf32, #tpu.memory_space<smem>>, %arg7: memref<1xf32, #tpu.memory_space<smem>>) -> (i32, i32, i32) {
    %c0_i32 = arith.constant 0 : i32
    %c0_i32_0 = arith.constant 0 : i32
    %c0_i32_1 = arith.constant 0 : i32
    return %arg0, %c0_i32, %c0_i32_0 : i32, i32, i32
  }
  func.func @transform_4(%arg0: i32, %arg1: memref<3x3xf32, #tpu.memory_space<smem>>, %arg2: memref<3xf32, #tpu.memory_space<smem>>, %arg3: memref<4x3xf32, #tpu.memory_space<smem>>, %arg4: memref<4xf32, #tpu.memory_space<smem>>, %arg5: memref<4x3xf32, #tpu.memory_space<smem>>, %arg6: memref<4xf32, #tpu.memory_space<smem>>, %arg7: memref<1xf32, #tpu.memory_space<smem>>) -> (i32, i32, i32) {
    %c0_i32 = arith.constant 0 : i32
    %c0_i32_0 = arith.constant 0 : i32
    %c0_i32_1 = arith.constant 0 : i32
    return %arg0, %c0_i32, %c0_i32_0 : i32, i32, i32
  }
}

</mosaic_0001>

<bundles_post_ra>
// kernel: tpu_custom_call.1
= control target key start
LH: loop header
LB: loop body
LE: loop exit
PB: predicated region body
PF: predicated region fallthrough
CT: control target
= control target key end

     0   :  { %s2079_s0 = inlined_call_operand.vmem [shape: f32[3,3], index: 0, kind: input, shape index: {}]   ;;  %s2080_s7 = inlined_call_operand.vmem [shape: f32[128,16], index: 7, kind: input, shape index: {}]   ;;  %s2081_s8 = inlined_call_operand.vmem [shape: f32[4,3,128], index: 8, kind: input, shape index: {}]   ;;  %s2082_s9 = inlined_call_operand.vmem [shape: f32[4,3,128], index: 9, kind: output, shape index: {0}]   ;;  %s2083_s10 = inlined_call_operand.hbm [shape: f32[4,1,16], index: 10, kind: output, shape index: {1}]   ;;  %s2084_s11 = inlined_call_operand.vmem [shape: f32[4,1,3], index: 11, kind: output, shape index: {2}]   ;;  %s2085_s1 = inlined_call_operand.vmem [shape: f32[3], index: 1, kind: input, shape index: {}]   ;;  %s2086_s2 = inlined_call_operand.vmem [shape: f32[4,3], index: 2, kind: input, shape index: {}]   ;;  %s2087_s3 = inlined_call_operand.vmem [shape: f32[4], index: 3, kind: input, shape index: {}]   ;;  %s2088_s4 = inlined_call_operand.vmem [shape: f32[4,3], index: 4, kind: input, shape index: {}]   ;;  %s2089_s5 = inlined_call_operand.vmem [shape: f32[4], index: 5, kind: input, shape index: {}]   ;;  %s2090_s6 = inlined_call_operand.<no memory space> [shape: f32[1], index: 6, kind: input, shape index: {}]  }
   0x1   :  { %s17_s19 = sshll.u32 %s2079_s0, 4  ;;  %s21_s22 = sshll.u32 %s2085_s1, 4  ;;  %s18_s19 = int_to_ptr.vmem [resolvable:$true] %s17_s19  ;;  %s22_s22 = int_to_ptr.vmem [resolvable:$true] %s21_s22 }
   0x2   :  { %s1439_s23 = scalar_lea.vmem %s18_s19, 64  ;;  %p1444_p1 = scmp.lt.s32.totalorder %s18_s19, %s18_s19 }
   0x3   :  { %p1440_p0 = scmp.ne.s32.totalorder %s18_s19, %s1439_s23  ;;  %p1445_p2 = scmp.lt.s32.totalorder %s1439_s23, %s1439_s23 }
   0x5   :  { %p1446_p3 = por %p1445_p2, %p1444_p1 }
   0x7   :  { %p1447_p4 = pnand %p1446_p3, %p1440_p0 }
   0x9   :  { %1450 = shalt.err (!%p1447_p4)  }
   0xa   :  { %s1577_s24 = smov [#allocation3]   ;;  %s1451_s25 = scalar_lea.vmem %s22_s22, 16 }
   0xb   :  { %20 = dma.vmem_to_smem %s18_s19, 64, %s1577_s24, [#allocation2] }
   0xc   :  { %p1452_p5 = scmp.ne.s32.totalorder %s22_s22, %s1451_s25  ;;  %p1456_p6 = scmp.lt.s32.totalorder %s22_s22, %s22_s22 }
   0xd   :  { %p1457_p7 = scmp.lt.s32.totalorder %s1451_s25, %s1451_s25 }
   0xf   :  { %p1458_p8 = por %p1457_p7, %p1456_p6 }
  0x11   :  { %p1459_p9 = pnand %p1458_p8, %p1452_p5 }
  0x13   :  { %1462 = shalt.err (!%p1459_p9)  }
  0x14   :  { %s1578_s0 = smov [#allocation4]   ;;  %s25_s27 = sshll.u32 %s2086_s2, 4  ;;  %s26_s27 = int_to_ptr.vmem [resolvable:$true] %s25_s27 }
  0x15   :  { %24 = dma.vmem_to_smem %s22_s22, 16, %s1578_s0, [#allocation2] }
  0x16   :  { %s29_s30 = sshll.u32 %s2087_s3, 4  ;;  %s1463_s12 = scalar_lea.vmem %s26_s27, 64  ;;  %s30_s30 = int_to_ptr.vmem [resolvable:$true] %s29_s30 }
  0x17   :  { %p1464_p10 = scmp.ne.s32.totalorder %s26_s27, %s1463_s12  ;;  %p1468_p11 = scmp.lt.s32.totalorder %s26_s27, %s26_s27 }
  0x18   :  { %p1469_p12 = scmp.lt.s32.totalorder %s1463_s12, %s1463_s12 }
  0x1a   :  { %p1470_p13 = por %p1469_p12, %p1468_p11 }
  0x1c   :  { %p1471_p0 = pnand %p1470_p13, %p1464_p10 }
  0x1e   :  { %1474 = shalt.err (!%p1471_p0)  }
  0x1f   :  { %s1579_s13 = smov [#allocation5]   ;;  %s1475_s14 = scalar_lea.vmem %s30_s30, 16 }
  0x20   :  { %28 = dma.vmem_to_smem %s26_s27, 64, %s1579_s13, [#allocation2] }
  0x21   :  { %p1476_p1 = scmp.ne.s32.totalorder %s30_s30, %s1475_s14  ;;  %p1480_p2 = scmp.lt.s32.totalorder %s30_s30, %s30_s30 }
  0x22   :  { %p1481_p3 = scmp.lt.s32.totalorder %s1475_s14, %s1475_s14 }
  0x24   :  { %p1482_p4 = por %p1481_p3, %p1480_p2 }
  0x26   :  { %p1483_p5 = pnand %p1482_p4, %p1476_p1 }
  0x28   :  { %1486 = shalt.err (!%p1483_p5)  }
  0x29   :  { %s1580_s2 = smov [#allocation6]   ;;  %s33_s16 = sshll.u32 %s2088_s4, 4  ;;  %s34_s16 = int_to_ptr.vmem [resolvable:$true] %s33_s16 }
  0x2a   :  { %32 = dma.vmem_to_smem %s30_s30, 16, %s1580_s2, [#allocation2] }
  0x2b   :  { %s37_s19 = sshll.u32 %s2089_s5, 4  ;;  %s1487_s20 = scalar_lea.vmem %s34_s16, 64  ;;  %s38_s19 = int_to_ptr.vmem [resolvable:$true] %s37_s19 }
  0x2c   :  { %p1488_p6 = scmp.ne.s32.totalorder %s34_s16, %s1487_s20  ;;  %p1492_p7 = scmp.lt.s32.totalorder %s34_s16, %s34_s16 }
  0x2d   :  { %p1493_p8 = scmp.lt.s32.totalorder %s1487_s20, %s1487_s20 }
  0x2f   :  { %p1494_p9 = por %p1493_p8, %p1492_p7 }
  0x31   :  { %p1495_p10 = pnand %p1494_p9, %p1488_p6 }
  0x33   :  { %1498 = shalt.err (!%p1495_p10)  }
  0x34   :  { %s1581_s21 = smov [#allocation7]   ;;  %s1499_s22 = scalar_lea.vmem %s38_s19, 16 }
  0x35   :  { %36 = dma.vmem_to_smem %s34_s16, 64, %s1581_s21, [#allocation2] }
  0x36   :  { %p1500_p11 = scmp.ne.s32.totalorder %s38_s19, %s1499_s22  ;;  %p1504_p12 = scmp.lt.s32.totalorder %s38_s19, %s38_s19 }
  0x37   :  { %p1505_p13 = scmp.lt.s32.totalorder %s1499_s22, %s1499_s22 }
  0x39   :  { %p1506_p0 = por %p1505_p13, %p1504_p12 }
  0x3b   :  { %p1507_p1 = pnand %p1506_p0, %p1500_p11 }
  0x3d   :  { %1510 = shalt.err (!%p1507_p1)  }
  0x3e   :  { %s1582_s4 = smov [#allocation8]   ;;  %41 = sst [smem:[#allocation9]] %s2090_s6 }
  0x3f   :  { %40 = dma.vmem_to_smem %s38_s19, 16, %s1582_s4, [#allocation2] }
  0x40   :  { %1555 = dma.done.wait [#allocation2], 240 }
  0x41   :  { %1556 = vsyncadd [#allocation2], 4294967056 }
  0x42   :  { %43 = sfence }
  0x43   :  { %44 = vsyncpa [#allocation11], 0 }
  0x44   :  { %46 = vsyncpa [#allocation11 + $0x1], 0  ;;  %s1671_s24 = smov 0   ;;  %s1673_s25 = smov 0  }
  0x45   :  { %s1675_s0 = smov 0   ;;  %s1677_s1 = smov 0  }
  0x46 LB: > { %s1692_s6 = sadd.s32 4294967295, %s1575_s1   ;;  %s1130_s26 = sadd.s32 4294967294, %s1575_s1   ;;  %s1575_s1 = sphi %s1677_s1, %s2096_s1   ;;  %s1571_s0 = sphi %s1675_s0, %s2095_s0   ;;  %s1567_s25 = sphi %s1673_s25, %s2094_s25   ;;  %s1563_s24 = sphi %s1671_s24, %s2093_s24  }
  0x47   : > { %s1696_s27 = sadd.s32 1, %s1575_s1   ;;  %s132_s28 = sadd.s32 1, %s1571_s0 }
  0x48   : > { %s129_s29 = ssub.s32 %s1575_s1, %s1696_s27  ;;  %p142_p2 = scmp.ne.s32.totalorder %s1571_s0, %s1567_s25 }
  0x49   : > { %p130_p3 = scmp.eq.s32.totalorder %s129_s29, 0  ;;  %p143_p4 = scmp.eq.s32.totalorder %s1692_s6, 1 }
  0x4a   : > { %p148_p5 = scmp.ne.s32.totalorder %s1567_s25, %s1563_s24  ;;  %p149_p6 = scmp.eq.s32.totalorder %s1130_s26, 1 }
  0x4b   : > { %s1707_s30 = scalar_select %p130_p3, %s1571_s0, %s132_s28  }
  0x4c   : > { %p1709_p7 = por %p143_p4, %p142_p2  ;;  %p1713_p8 = por %p149_p6, %p148_p5 }
  0x4d   : > { %p1133_p9 = scmp.ge.s32.totalorder %s1575_s1, 1  ;;  %p205_p10 = scmp.lt.s32.totalorder %s1575_s1, 3 }
  0x4f   : > { %p206_p11 = pnand %p1133_p9, %p205_p10 }
  0x50   : > { %v258_v0 = vld [vmem:[%s2080_s7] sm:$0xff] (!%p206_p11)  ;;  %v259_v1 = vld [vmem:[%s2080_s7 + $0x8] sm:$0xff] (!%p206_p11)  ;;  %v260_v2 = vld [vmem:[%s2080_s7 + $0x10] sm:$0xff] (!%p206_p11)  ;;  %v1583_v3 = vmov (!%p206_p11), 0.0|0.0   ;;  %vm1584_vm0 = vmmov (!%p206_p11), 0   ;;  %v1585_v6 = vmov (!%p206_p11), 0.0  }
  0x51   : > { %209 = sbr.rel (%p206_p11) target bundleno = 1099 (0x44b), region = 28  ;;  %1330 = vmatprep.subr.bf16.mxu0 (!%p206_p11), %v1583_v3  ;;  %1354 = vmatprep.subr.bf16.mxu1 (!%p206_p11), %v1583_v3  ;;  %v1331_v4 = vpack.c.bf16 (!%p206_p11), %v259_v1, %v258_v0  ;;  %v261_v5 = vld [vmem:[%s2080_s7 + $0x18] sm:$0xff] (!%p206_p11)  ;;  %v262_v8 = vld [vmem:[%s2080_s7 + $0x20] sm:$0xff] (!%p206_p11)  ;;  %v263_v9 = vld [vmem:[%s2080_s7 + $0x28] sm:$0xff] (!%p206_p11)  ;;  %s1135_s15 = sshll.u32 (!%p206_p11), %s1692_s6, 1  ;;  %vm566_vm1 = vcmask (!%p206_p11), 122880  }
  0x52   : > { %1292 = vmatprep.mubr.msk.f32.mxu0 (!%p206_p11), %vm1584_vm0, %v1585_v6  ;;  %1327 = vmatprep.mubr.msk.f32.mxu1 (!%p206_p11), %vm1584_vm0, %v1585_v6  ;;  %v1334_v7 = vpack.c.bf16 (!%p206_p11), %v261_v5, %v260_v2  ;;  %v1337_v10 = vpack.c.bf16 (!%p206_p11), %v263_v9, %v262_v8  ;;  %v264_v11 = vld [vmem:[%s2080_s7 + $0x30] sm:$0xff] (!%p206_p11)  ;;  %v265_v12 = vld [vmem:[%s2080_s7 + $0x38] sm:$0xff] (!%p206_p11)  ;;  %v266_v14 = vld [vmem:[%s2080_s7 + $0x40] sm:$0xff] (!%p206_p11)  ;;  %p241_p12 = scmp.lt.s32.totalorder (!%p206_p11), %s1135_s15, 3  ;;  %s1782_s16 = sld [smem:[#allocation7]] (!%p206_p11)  ;;  %vm617_vm2 = vcmask (!%p206_p11), 1040384  }
  0x53   : > { %1332 = vmatpush3.bf16.msra.mxu0 (!%p206_p11), %v1331_v4  ;;  %1356 = vmatpush3.bf16.msra.mxu1 (!%p206_p11), %v1331_v4  ;;  %v1340_v13 = vpack.c.bf16 (!%p206_p11), %v265_v12, %v264_v11  ;;  %v267_v15 = vld [vmem:[%s2080_s7 + $0x48] sm:$0xff] (!%p206_p11)  ;;  %v268_v17 = vld [vmem:[%s2080_s7 + $0x50] sm:$0xff] (!%p206_p11)  ;;  %v269_v18 = vld [vmem:[%s2080_s7 + $0x58] sm:$0xff] (!%p206_p11)  ;;  %s1784_s17 = sld [smem:[#allocation7 + $0x1]] (!%p206_p11)  ;;  %s1786_s18 = sld [smem:[#allocation7 + $0x2]] (!%p206_p11)  ;;  %vm621_vm3 = vcmask (!%p206_p11), 7168  }
  0x54   : > { %1333 = vmatprep.subr.bf16.mxu0 (!%p206_p11), %v1583_v3  ;;  %1357 = vmatprep.subr.bf16.mxu1 (!%p206_p11), %v1583_v3  ;;  %v1343_v16 = vpack.c.bf16 (!%p206_p11), %v267_v15, %v266_v14  ;;  %v1346_v19 = vpack.c.bf16 (!%p206_p11), %v269_v18, %v268_v17  ;;  %v270_v20 = vld [vmem:[%s2080_s7 + $0x60] sm:$0xff] (!%p206_p11)  ;;  %v271_v21 = vld [vmem:[%s2080_s7 + $0x68] sm:$0xff] (!%p206_p11)  ;;  %v272_v23 = vld [vmem:[%s2080_s7 + $0x70] sm:$0xff] (!%p206_p11)  ;;  %s1788_s19 = sld [smem:[#allocation7 + $0x80]] (!%p206_p11)  ;;  %s1790_s20 = sld [smem:[#allocation7 + $0x81]] (!%p206_p11)  ;;  %vm623_vm4 = vcmask (!%p206_p11), 15360  }
  0x55   : > { %v1349_v22 = vpack.c.bf16 (!%p206_p11), %v271_v21, %v270_v20  ;;  %v273_v24 = vld [vmem:[%s2080_s7 + $0x78] sm:$0xff] (!%p206_p11)  ;;  %s1792_s21 = sld [smem:[#allocation7 + $0x82]] (!%p206_p11)  ;;  %s1794_s22 = sld [smem:[#allocation7 + $0x100]] (!%p206_p11)  ;;  %vm619_vm5 = vcmask (!%p206_p11), 1041408   ;;  %vm633_vm6 = vcmask (!%p206_p11), 16384  }
  0x56   : > { %v1352_v25 = vpack.c.bf16 (!%p206_p11), %v273_v24, %v272_v23  ;;  %s1796_s4 = sld [smem:[#allocation7 + $0x101]] (!%p206_p11)  ;;  %s1798_s5 = sld [smem:[#allocation8]] (!%p206_p11) }
  0x57   : > { %1335 = vmatpush3.bf16.msra.mxu0 (!%p206_p11), %v1334_v7  ;;  %1359 = vmatpush3.bf16.msra.mxu1 (!%p206_p11), %v1334_v7  ;;  %s1800_s23 = sld [smem:[#allocation7 + $0x102]] (!%p206_p11)  ;;  %s1802_s26 = sld [smem:[#allocation8 + $0x1]] (!%p206_p11) }
  0x58   : > { %1336 = vmatprep.subr.bf16.mxu0 %v1583_v3  ;;  %1360 = vmatprep.subr.bf16.mxu1 %v1583_v3  ;;  %s2098_s15 = smov (!%p241_p12, %s1135_s15), 3  ;;  %s1804_s28 = sld [smem:[#allocation7 + $0x180]]  ;;  %v788_v28 = vstv %s1782_s16 }
  0x59   : > { %s1136_s29 = sshll.u32 %s2098_s15, 2  ;;  %v791_v29 = vstv %s1784_s17  ;;  %v798_v30 = vstv %s1786_s18  ;;  %s1814_s14 = sld [smem:[#allocation7 + $0x181]] }
  0x5a   : > { %s244_s3 = scalar_lea.vmem %s2081_s8, %s1136_s29  ;;  %v808_v31 = vstv %s1788_s19  ;;  %v811_v32 = vstv %s1790_s20  ;;  %s1834_s2 = sld [smem:[#allocation7 + $0x182]] }
  0x5b   : > { %1338 = vmatpush3.bf16.msra.mxu0 %v1337_v10  ;;  %1362 = vmatpush3.bf16.msra.mxu1 %v1337_v10  ;;  %v1776_v26 = vld [vmem:[%s244_s3] sm:$0x7]  ;;  %v1778_v27 = vld [vmem:[%s244_s3 + $0x4] sm:$0x7]  ;;  %v818_v33 = vstv %s1792_s21  ;;  %v828_v34 = vstv %s1794_s22  ;;  %s1840_s3 = sld [smem:[#allocation8 + $0x2]]  ;;  %s1849_s16 = sld [smem:[#allocation8 + $0x3]] }
  0x5c   : > { %1339 = vmatprep.subr.bf16.mxu0 %v1583_v3  ;;  %1363 = vmatprep.subr.bf16.mxu1 %v1583_v3  ;;  %v831_v35 = vstv %s1796_s4  ;;  %v805_v38 = vstv %s1798_s5  ;;  %s1870_s17 = sld [smem:[#allocation5]]  ;;  %s1179_s18 = sld [smem:[#allocation5 + $0x1]] }
  0x5d   : > { %v825_v39 = vstv %s1802_s26  ;;  %v838_v40 = vstv %s1800_s23  ;;  %s1182_s19 = sld [smem:[#allocation5 + $0x81]]  ;;  %s1872_s20 = sld [smem:[#allocation5 + $0x2]] }
  0x5e   : > { %v848_v41 = vstv %s1804_s28  ;;  %s1874_s21 = sld [smem:[#allocation5 + $0x80]]  ;;  %s1876_s22 = sld [smem:[#allocation5 + $0x82]] }
  0x5f   : > { %1341 = vmatpush3.bf16.msra.mxu0 %v1340_v13  ;;  %1365 = vmatpush3.bf16.msra.mxu1 %v1340_v13  ;;  %v851_v7 = vstv %s1814_s14  ;;  %s1186_s4 = sld [smem:[#allocation5 + $0x101]]  ;;  %s1878_s5 = sld [smem:[#allocation5 + $0x100]] }
  0x60   : > { %1342 = vmatprep.subr.bf16.mxu0 %v1583_v3  ;;  %1366 = vmatprep.subr.bf16.mxu1 %v1583_v3  ;;  %v858_v23 = vstv %s1834_s2  ;;  %s1880_s23 = sld [smem:[#allocation5 + $0x102]]  ;;  %s1882_s26 = sld [smem:[#allocation5 + $0x180]] }
  0x61   : > { %s1884_s28 = sld [smem:[#allocation5 + $0x181]]  ;;  %s1886_s14 = sld [smem:[#allocation5 + $0x182]] }
  0x62   : > { %s1905_s2 = sld [smem:[#allocation6 + $0x1]] }
  0x63   : > { %1344 = vmatpush3.bf16.msra.mxu0 %v1343_v16  ;;  %1368 = vmatpush3.bf16.msra.mxu1 %v1343_v16 }
  0x64   : > { %1345 = vmatprep.subr.bf16.mxu0 %v1583_v3  ;;  %1369 = vmatprep.subr.bf16.mxu1 %v1583_v3 }
  0x67   : > { %1347 = vmatpush3.bf16.msra.mxu0 %v1346_v19  ;;  %1371 = vmatpush3.bf16.msra.mxu1 %v1346_v19 }
  0x68   : > { %1348 = vmatprep.subr.bf16.mxu0 %v1583_v3  ;;  %1372 = vmatprep.subr.bf16.mxu1 %v1583_v3 }
  0x6b   : > { %1350 = vmatpush3.bf16.msra.mxu0 %v1349_v22  ;;  %1374 = vmatpush3.bf16.msra.mxu1 %v1349_v22 }
  0x6c   : > { %1351 = vmatprep.subr.bf16.mxu0 %v1583_v3  ;;  %1375 = vmatprep.subr.bf16.mxu1 %v1583_v3 }
  0x6f   : > { %1353 = vmatpush3.bf16.msra.mxu0 %v1352_v25  ;;  %1377 = vmatpush3.bf16.msra.mxu1 %v1352_v25 }
  0x72   : > { %1293 = vmatmul.mubr.f32.vlgmr.msra.gmra.mrb[0].mxu0 %v1776_v26  ;;  %1328 = vmatmul.mubr.f32.vlgmr.msra.gmra.mrb[0].mxu1 %v1778_v27 }
 0x145   : > { %v1816_v36 = vpop.f32.mrb[0].mxu0  ;;  %v1818_v37 = vpop.f32.mrb[0].mxu1 }
 0x146   : > { %v1294_v42 = vpop.f32.mrb[1].mxu0  ;;  %v1329_v43 = vpop.f32.mrb[1].mxu1  ;;  %v789_v44 = vmul.f32 %v788_v28, %v1818_v37  ;;  %v792_v45 = vmul.f32 %v791_v29, %v1818_v37  ;;  %v799_v46 = vmul.f32 %v798_v30, %v1818_v37  ;;  %v428_v47 = vmul.f32 %v788_v28, %v1816_v36 }
 0x147   : > { %v431_v48 = vmul.f32 %v791_v29, %v1816_v36  ;;  %v438_v49 = vmul.f32 %v798_v30, %v1816_v36  ;;  %v809_v50 = vmul.f32 %v808_v31, %v1818_v37  ;;  %v812_v51 = vmul.f32 %v811_v32, %v1818_v37 }
 0x148   : > { %v794_v52 = vrot.slane %v792_v45, 1  ;;  %v801_v53 = vrot.slane %v799_v46, 2  ;;  %v819_v54 = vmul.f32 %v818_v33, %v1818_v37  ;;  %v448_v55 = vmul.f32 %v808_v31, %v1816_v36 }
 0x149   : > { %v433_v56 = vrot.slane %v431_v48, 1  ;;  %v440_v57 = vrot.slane %v438_v49, 2  ;;  %v814_v58 = vrot.slane %v812_v51, 1  ;;  %v451_v59 = vmul.f32 %v811_v32, %v1816_v36 }
 0x14a   : > { %v796_v60 = vadd.f32 %v794_v52, %v789_v44  ;;  %v821_v61 = vrot.slane %v819_v54, 2  ;;  %v458_v62 = vmul.f32 %v818_v33, %v1816_v36  ;;  %v829_v63 = vmul.f32 %v828_v34, %v1818_v37 }
 0x14b   : > { %v435_v0 = vadd.f32 %v433_v56, %v428_v47  ;;  %v816_v1 = vadd.f32 %v814_v58, %v809_v50  ;;  %v453_v2 = vrot.slane %v451_v59, 1  ;;  %v832_v3 = vmul.f32 %v831_v35, %v1818_v37 }
 0x14c   : > { %v803_v4 = vadd.f32 %v801_v53, %v796_v60  ;;  %v460_v5 = vrot.slane %v458_v62, 2  ;;  %v839_v6 = vmul.f32 %v838_v40, %v1818_v37  ;;  %v471_v14 = vmul.f32 %v831_v35, %v1816_v36 }
 0x14d   : > { %v442_v8 = vadd.f32 %v440_v57, %v435_v0  ;;  %v823_v9 = vadd.f32 %v821_v61, %v816_v1  ;;  %v455_v10 = vadd.f32 %v453_v2, %v448_v55  ;;  %v834_v11 = vrot.slane %v832_v3, 1 }
 0x14e   : > { %v806_v12 = vadd.f32 %v805_v38, %v803_v4  ;;  %v841_v13 = vrot.slane %v839_v6, 2  ;;  %v478_v15 = vmul.f32 %v838_v40, %v1816_v36  ;;  %v468_v21 = vmul.f32 %v828_v34, %v1816_v36 }
 0x14f   : > { %v445_v16 = vadd.f32 %v805_v38, %v442_v8  ;;  %v826_v17 = vadd.f32 %v825_v39, %v823_v9  ;;  %v462_v18 = vadd.f32 %v460_v5, %v455_v10  ;;  %v836_v19 = vadd.f32 %v834_v11, %v829_v63 }
 0x150   : > { %v927_v20 = vsel %vm566_vm1, %v806_v12, 0.0  ;;  %v473_v22 = vrot.slane %v471_v14, 1  ;;  %v480_v29 = vrot.slane %v478_v15, 2  ;;  %v849_v31 = vmul.f32 %v848_v41, %v1818_v37 }
 0x151   : > { %928 = vadd.xlane.f32.xlu1 %v927_v20  ;;  %v567_v24 = vsel %vm566_vm1, %v445_v16, 0.0  ;;  %v465_v25 = vadd.f32 %v825_v39, %v462_v18  ;;  %v843_v28 = vadd.f32 %v841_v13, %v836_v19  ;;  %v852_v32 = vmul.f32 %v851_v7, %v1818_v37 }
 0x152   : > { %568 = vadd.xlane.f32.xlu0 %v567_v24  ;;  %v475_v30 = vadd.f32 %v473_v22, %v468_v21  ;;  %v859_v33 = vmul.f32 %v858_v23, %v1818_v37  ;;  %v931_v34 = vsel %vm566_vm1, %v826_v17, 0.0  ;;  %v845_v35 = vstv %s1840_s3  ;;  %s1917_s3 = sld [smem:[#allocation6]] }
 0x153   : > { %v491_v38 = vmul.f32 %v851_v7, %v1816_v36  ;;  %v498_v40 = vmul.f32 %v858_v23, %v1816_v36  ;;  %v846_v39 = vadd.f32 %v845_v35, %v843_v28  ;;  %v854_v43 = vrot.slane %v852_v32, 1 }
 0x154   : > { %v482_v42 = vadd.f32 %v480_v29, %v475_v30  ;;  %v861_v44 = vrot.slane %v859_v33, 2  ;;  %v571_v45 = vsel %vm566_vm1, %v465_v25, 0.0  ;;  %v488_v46 = vmul.f32 %v848_v41, %v1816_v36 }
 0x155   : > { %932 = vadd.xlane.f32.xlu1 %v931_v34  ;;  %v493_v47 = vrot.slane %v491_v38, 1  ;;  %v856_v49 = vadd.f32 %v854_v43, %v849_v31  ;;  %v500_v51 = vrot.slane %v498_v40, 2  ;;  %v936_v52 = vsel %vm566_vm1, %v846_v39, 0.0 }
 0x156   : > { %572 = vadd.xlane.f32.xlu0 %v571_v45  ;;  %v485_v48 = vadd.f32 %v845_v35, %v482_v42  ;;  %v865_v54 = vstv %s1849_s16  ;;  %v731_v60 = vstv %s1182_s19  ;;  %v708_v61 = vstv %s1870_s17  ;;  %s1919_s16 = sld [smem:[#allocation6 + $0x2]]  ;;  %s1926_s17 = sld [smem:[#allocation6 + $0x3]] }
 0x157   : > { %v495_v50 = vadd.f32 %v493_v47, %v488_v46  ;;  %v863_v53 = vadd.f32 %v861_v44, %v856_v49  ;;  %v711_v62 = vstv %s1179_s18  ;;  %v718_v63 = vstv %s1872_s20  ;;  %s274_s18 = sld [smem:[#allocation9]]  ;;  %s1943_s19 = sld [smem:[#allocation3 + $0x101]] }
 0x158   : > { %v576_v55 = vsel %vm566_vm1, %v485_v48, 0.0  ;;  %v712_v0 = vmul.f32 %v711_v62, %v1818_v37  ;;  %v728_v1 = vstv %s1874_s21  ;;  %v732_v2 = vmul.f32 %v731_v60, %v1818_v37  ;;  %s1171_s20 = sld [smem:[#allocation3 + $0x81]] }
 0x159   : > { %937 = vadd.xlane.f32.xlu1 %v936_v52  ;;  %v502_v56 = vadd.f32 %v500_v51, %v495_v50  ;;  %v866_v57 = vadd.f32 %v865_v54, %v863_v53  ;;  %v751_v3 = vstv %s1186_s4  ;;  %v738_v4 = vstv %s1876_s22  ;;  %s1945_s21 = sld [smem:[#allocation3 + $0x1]]  ;;  %s1947_s22 = sld [smem:[#allocation3 + $0x100]] }
 0x15a   : > { %577 = vadd.xlane.f32.xlu0 %v576_v55  ;;  %v371_v5 = vmul.f32 %v731_v60, %v1816_v36  ;;  %v748_v6 = vstv %s1878_s5  ;;  %v758_v7 = vstv %s1880_s23  ;;  %v351_v8 = vmul.f32 %v711_v62, %v1816_v36  ;;  %s1949_s4 = sld [smem:[#allocation3 + $0x102]]  ;;  %s1951_s23 = sld [smem:[#allocation3 + $0x80]] }
 0x15b   : > { %v505_v58 = vadd.f32 %v865_v54, %v502_v56  ;;  %v941_v59 = vsel %vm566_vm1, %v866_v57, 0.0  ;;  %v752_v9 = vmul.f32 %v751_v3, %v1818_v37  ;;  %v768_v10 = vstv %s1882_s26  ;;  %s1172_s5 = sld [smem:[#allocation3 + $0x82]]  ;;  %s1953_s26 = sld [smem:[#allocation3]] }
 0x15c   : > { %v771_v11 = vstv %s1884_s28  ;;  %v709_v12 = vmul.f32 %v708_v61, %v1818_v37  ;;  %v719_v13 = vmul.f32 %v718_v63, %v1818_v37  ;;  %v391_v14 = vmul.f32 %v751_v3, %v1816_v36  ;;  %s1955_s28 = sld [smem:[#allocation3 + $0x2]] }
 0x15d   : > { %942 = vadd.xlane.f32.xlu1 %v941_v59  ;;  %v581_v41 = vsel %vm566_vm1, %v505_v58, 0.0  ;;  %v778_v15 = vstv %s1886_s14  ;;  %v714_v16 = vrot.slane %v712_v0, 1  ;;  %v729_v17 = vmul.f32 %v728_v1, %v1818_v37  ;;  %s1970_s14 = sld [smem:[#allocation4 + $0x2]] }
 0x15e   : > { %582 = vadd.xlane.f32.xlu0 %v581_v41  ;;  %v734_v18 = vrot.slane %v732_v2, 1  ;;  %v739_v19 = vmul.f32 %v738_v4, %v1818_v37  ;;  %v348_v20 = vmul.f32 %v708_v61, %v1816_v36  ;;  %v358_v21 = vmul.f32 %v718_v63, %v1816_v36 }
 0x15f   : > { %v373_v22 = vrot.slane %v371_v5, 1  ;;  %v759_v23 = vmul.f32 %v758_v7, %v1818_v37  ;;  %v353_v24 = vrot.slane %v351_v8, 1  ;;  %v749_v25 = vmul.f32 %v748_v6, %v1818_v37 }
 0x160   : > { %v754_v28 = vrot.slane %v752_v9, 1  ;;  %v772_v29 = vmul.f32 %v771_v11, %v1818_v37  ;;  %v368_v30 = vmul.f32 %v728_v1, %v1816_v36  ;;  %v378_v31 = vmul.f32 %v738_v4, %v1816_v36 }
 0x161   : > { %v393_v32 = vrot.slane %v391_v14, 1  ;;  %v411_v33 = vmul.f32 %v771_v11, %v1816_v36  ;;  %v716_v34 = vadd.f32 %v714_v16, %v709_v12  ;;  %v721_v35 = vrot.slane %v719_v13, 2 }
 0x162   : > { %v736_v38 = vadd.f32 %v734_v18, %v729_v17  ;;  %v741_v40 = vrot.slane %v739_v19, 2  ;;  %v375_v39 = vadd.f32 %v373_v22, %v368_v30  ;;  %v761_v42 = vrot.slane %v759_v23, 2 }
 0x163   : > { %v388_v43 = vmul.f32 %v748_v6, %v1816_v36  ;;  %v398_v44 = vmul.f32 %v758_v7, %v1816_v36  ;;  %v756_v45 = vadd.f32 %v754_v28, %v749_v25  ;;  %v769_v46 = vmul.f32 %v768_v10, %v1818_v37 }
 0x164   : > { %v774_v47 = vrot.slane %v772_v29, 1  ;;  %v779_v48 = vmul.f32 %v778_v15, %v1818_v37  ;;  %v355_v50 = vadd.f32 %v353_v24, %v348_v20  ;;  %v380_v51 = vrot.slane %v378_v31, 2 }
 0x165   : > { %v395_v52 = vadd.f32 %v393_v32, %v388_v43  ;;  %v413_v53 = vrot.slane %v411_v33, 1  ;;  %v360_v55 = vrot.slane %v358_v21, 2  ;;  %v745_v56 = vstv %s1905_s2  ;;  %s1974_s2 = sld [smem:[#allocation4 + $0x1]] }
 0x166   : > { %v743_v57 = vadd.f32 %v741_v40, %v736_v38  ;;  %v382_v58 = vadd.f32 %v380_v51, %v375_v39  ;;  %v400_v59 = vrot.slane %v398_v44, 2  ;;  %v408_v41 = vmul.f32 %v768_v10, %v1816_v36 }
 0x167   : > { %v418_v60 = vmul.f32 %v778_v15, %v1816_v36  ;;  %v723_v61 = vadd.f32 %v721_v35, %v716_v34  ;;  %v763_v62 = vadd.f32 %v761_v42, %v756_v45  ;;  %v776_v63 = vadd.f32 %v774_v47, %v769_v46 }
 0x168   : > { %v781_v0 = vrot.slane %v779_v48, 2  ;;  %v362_v1 = vadd.f32 %v360_v55, %v355_v50  ;;  %v402_v3 = vadd.f32 %v400_v59, %v395_v52  ;;  %v415_v4 = vadd.f32 %v413_v53, %v408_v41 }
 0x169   : > { %v725_v5 = vstv %s1917_s3  ;;  %v746_v6 = vadd.f32 %v745_v56, %v743_v57  ;;  %v765_v8 = vstv %s1919_s16  ;;  %v385_v9 = vadd.f32 %v745_v56, %v382_v58  ;;  %s1977_s3 = sld [smem:[#allocation4]]  ;;  %s231_s16 = sand.u32 1, %s1567_s25  }
 0x16a   : > { %v420_v11 = vrot.slane %v418_v60, 2  ;;  %v726_v12 = vadd.f32 %v725_v5, %v723_v61  ;;  %v766_v13 = vadd.f32 %v765_v8, %v763_v62  ;;  %v783_v14 = vadd.f32 %v781_v0, %v776_v63 }
 0x16b   : > { %v365_v15 = vadd.f32 %v725_v5, %v362_v1  ;;  %v405_v18 = vadd.f32 %v765_v8, %v402_v3  ;;  %v785_v23 = vstv %s1926_s17  ;;  %v586_v39 = vstv %s274_s18  ;;  %s1134_s17 = sshll.u32 %s231_s16, 1 }
 0x16c   : > { %v422_v19 = vadd.f32 %v420_v11, %v415_v4  ;;  %v786_v29 = vadd.f32 %v785_v23, %v783_v14  ;;  %v550_v58 = vstv %s1943_s19  ;;  %v530_v59 = vstv %s1171_s20  ;;  %s1996_s18 = scalar_lea.vmem [#allocation10], %s1134_s17 }
 0x16d   : > { %v510_v41 = vstv %s1945_s21  ;;  %v551_v60 = vmul.f32 %v550_v58, %v1816_v36  ;;  %v547_v61 = vstv %s1947_s22  ;;  %v557_v62 = vstv %s1949_s4  ;;  %s256_s21 = scalar_lea.vmem %s2084_s11, %s2098_s15  ;;  %s1225_s22 = sshll.u32 %s1692_s6, 5 }
 0x16e   : > { %v425_v32 = vadd.f32 %v785_v23, %v422_v19  ;;  %v531_v63 = vmul.f32 %v530_v59, %v1816_v36  ;;  %v537_v0 = vstv %s1172_s5  ;;  %v892_v1 = vmul.f32 %v1818_v37, %v530_v59  ;;  %s1587_s6 = smov [#allocation10]  }
 0x16f   : > { %v527_v3 = vstv %s1951_s23  ;;  %v507_v4 = vstv %s1953_s26  ;;  %v558_v8 = vmul.f32 %v557_v62, %v1816_v36  ;;  %v872_v19 = vmul.f32 %v1818_v37, %v510_v41  ;;  %s2024_s23 = scalar_lea.hbm %s2083_s10, %s1225_s22  ;;  %s1019_s26 = sshll.u32 %s1996_s18, 4  ;;  %s2027_s26 = int_to_ptr.vmem [resolvable:$true] %s1019_s26 }
 0x170   : > { %v889_v14 = vmul.f32 %v1818_v37, %v527_v3 }
 0x171   : > { %v560_v23 = vrot.slane %v558_v8, 2 }
 0x1de   : > { %v929_v49 = vpop.xlane.xlu1 %928 }
 0x1df   : > { %v569_v54 = vpop.xlane.xlu0 %568  ;;  %v930_v20 = vmul.f32 %v929_v49, %v726_v12  ;;  %v533_v12 = vrot.slane %v531_v63, 1 }
 0x1e0   : > { %v570_v24 = vmul.f32 %v569_v54, %v365_v15  ;;  %v894_v15 = vrot.slane %v892_v1, 1 }
 0x1e2   : > { %v933_v2 = vpop.xlane.xlu1 %932 }
 0x1e3   : > { %v573_v7 = vpop.xlane.xlu0 %572  ;;  %v934_v10 = vmul.f32 %v933_v2, %v746_v6  ;;  %v511_v2 = vmul.f32 %v510_v41, %v1816_v36  ;;  %v548_v6 = vmul.f32 %v547_v61, %v1816_v36 }
 0x1e4   : > { %v574_v16 = vmul.f32 %v573_v7, %v385_v9  ;;  %v553_v7 = vrot.slane %v551_v60, 1  ;;  %v517_v9 = vstv %s1955_s28  ;;  %s2031_s28 = scalar_lea.sflag [#allocation11], %s231_s16 }
 0x1e5   : > { %v935_v28 = vadd.f32 %v934_v10, %v930_v20  ;;  %v538_v10 = vmul.f32 %v537_v0, %v1816_v36 }
 0x1e6   : > { %v938_v17 = vpop.xlane.xlu1 %937  ;;  %v575_v30 = vadd.f32 %v574_v16, %v570_v24  ;;  %v513_v16 = vrot.slane %v511_v2, 1  ;;  %v555_v20 = vadd.f32 %v553_v7, %v548_v6 }
 0x1e7   : > { %v939_v21 = vmul.f32 %v938_v17, %v766_v13  ;;  %v578_v22 = vpop.xlane.xlu0 %577  ;;  %v899_v13 = vmul.f32 %v1818_v37, %v537_v0  ;;  %v528_v17 = vmul.f32 %v527_v3, %v1816_v36 }
 0x1e8   : > { %v579_v25 = vmul.f32 %v578_v22, %v405_v18  ;;  %v912_v18 = vmul.f32 %v1818_v37, %v550_v58  ;;  %v518_v22 = vmul.f32 %v517_v9, %v1816_v36 }
 0x1e9   : > { %v940_v33 = vadd.f32 %v939_v21, %v935_v28  ;;  %v508_v21 = vmul.f32 %v507_v4, %v1816_v36  ;;  %v535_v24 = vadd.f32 %v533_v12, %v528_v17  ;;  %v901_v28 = vrot.slane %v899_v13, 2 }
 0x1ea   : > { %v943_v31 = vpop.xlane.xlu1 %942  ;;  %v580_v38 = vadd.f32 %v579_v25, %v575_v30  ;;  %v540_v25 = vrot.slane %v538_v10, 2  ;;  %v879_v36 = vmul.f32 %v1818_v37, %v517_v9  ;;  %v1586_v9 = vmov 0  }
 0x1eb   : > { %v944_v34 = vmul.f32 %v943_v31, %v786_v29  ;;  %v583_v35 = vpop.xlane.xlu0 %582  ;;  %v896_v29 = vadd.f32 %v894_v15, %v889_v14  ;;  %v515_v30 = vadd.f32 %v513_v16, %v508_v21  ;;  %v909_v31 = vmul.f32 %v1818_v37, %v547_v61  ;;  %1429 = vset.pattern.permute.xlu0 %v1586_v9 }
 0x1ec   : > { %v584_v40 = vmul.f32 %v583_v35, %v425_v32  ;;  %v919_v32 = vmul.f32 %v1818_v37, %v557_v62  ;;  %v874_v35 = vrot.slane %v872_v19, 1  ;;  %1430 = vset.pattern.permute.xlu1 %v1586_v9 }
 0x1ed   : > { %v945_v42 = vadd.f32 %v944_v34, %v940_v33  ;;  %v914_v33 = vrot.slane %v912_v18, 1  ;;  %v869_v34 = vmul.f32 %v1818_v37, %v507_v4 }
 0x1ee   : > { %v585_v43 = vadd.f32 %v584_v40, %v580_v38  ;;  %v520_v38 = vrot.slane %v518_v22, 2  ;;  %v562_v40 = vadd.f32 %v560_v23, %v555_v20 }
 0x1ef   : > { %v946_v44 = vmul.f32 %v945_v42, %v586_v39  ;;  %v542_v42 = vadd.f32 %v540_v25, %v535_v24 }
 0x1f0   : > { %v587_v45 = vmul.f32 %v586_v39, %v585_v43  ;;  %v564_v39 = vstv %s1970_s14  ;;  %v544_v43 = vstv %s1974_s2  ;;  %s1511_s14 = scalar_lea.vmem %s2027_s26, 32  ;;  %s1515_s2 = sshll.u32 %s1587_s6, 4  ;;  %s1516_s2 = int_to_ptr.vmem [resolvable:$false] %s1515_s2 }
 0x1f1   : > { %v947_v46 = vsel %vm566_vm1, %v946_v44, -inf  ;;  %p1512_p13 = scmp.ne.s32.totalorder %s2027_s26, %s1511_s14  ;;  %p1518_p2 = scmp.lt.s32.totalorder %s2027_s26, %s1516_s2 }
 0x1f2   : > { %948 = vmax.xlane.f32.xlu1 %v947_v46  ;;  %v588_v47 = vsel %vm566_vm1, %v587_v45, -inf  ;;  %v524_v46 = vstv %s1977_s3  ;;  %s1517_s3 = scalar_lea.vmem %s1516_s2, 64 }
 0x1f3   : > { %589 = vmax.xlane.f32.xlu0 %v588_v47  ;;  %p1513_p0 = pnand %p1512_p13, %p1709_p7  ;;  %p1519_p3 = scmp.lt.s32.totalorder %s1517_s3, %s1511_s14 }
 0x1f5   : > { %p1514_p1 = pneg %p1513_p0  ;;  %p1520_p4 = por %p1519_p3, %p1518_p2 }
 0x1f7   : > { %p1521_p5 = pnand %p1520_p4, %p1514_p1 }
 0x27f   : > { %v949_v48 = vpop.xlane.xlu1 %948 }
 0x280   : > { %v950_v49 = vsub.f32 %v946_v44, %v949_v48  ;;  %v590_v50 = vpop.xlane.xlu0 %589  ;;  %v903_v44 = vadd.f32 %v901_v28, %v896_v29  ;;  %v916_v48 = vadd.f32 %v914_v33, %v909_v31 }
 0x281   : > { %v591_v51 = vsub.f32 %v587_v45, %v590_v50  ;;  %v522_v45 = vadd.f32 %v520_v38, %v515_v30  ;;  %v876_v50 = vadd.f32 %v874_v35, %v869_v34 }
 0x282   : > { %v951_v52 = vmul.f32 1.442695, %v950_v49  ;;  %v921_v49 = vrot.slane %v919_v32, 2  ;;  %v906_v58 = vadd.f32 %v903_v44, %v544_v43 }
 0x283   : > { %v592_v53 = vmul.f32 1.442695, %v591_v51  ;;  %v881_v51 = vrot.slane %v879_v36, 2  ;;  %v525_v59 = vadd.f32 %v524_v46, %v522_v45 }
 0x284   : > { %1431 = vpow2.f32 %v951_v52  ;;  %v923_v61 = vadd.f32 %v921_v49, %v916_v48 }
 0x285   : > { %1433 = vpow2.f32 %v592_v53  ;;  %v883_v62 = vadd.f32 %v881_v51, %v876_v50 }
 0x286   : > { %v926_v1 = vadd.f32 %v923_v61, %v564_v39 }
 0x287   : > { %v886_v2 = vadd.f32 %v883_v62, %v524_v46 }
 0x28e   : > { %v1935_v54 = vpop.eup %1431 }
 0x28f   : > { %v1937_v55 = vpop.eup %1433  ;;  %v953_v56 = vsel %vm566_vm1, %v1935_v54, 0.0 }
 0x290   : > { %954 = vadd.xlane.f32.xlu1 %v953_v56  ;;  %v594_v57 = vsel %vm566_vm1, %v1937_v55, 0.0  ;;  %v565_v56 = vadd.f32 %v564_v39, %v562_v40 }
 0x291   : > { %595 = vadd.xlane.f32.xlu0 %v594_v57  ;;  %v545_v57 = vadd.f32 %v544_v43, %v542_v42 }
 0x31d   : > { %v955_v5 = vpop.xlane.xlu1 %954 }
 0x31e   : > { %1435 = vrcp.f32 %v955_v5  ;;  %v596_v11 = vpop.xlane.xlu0 %595 }
 0x31f   : > { %1437 = vrcp.f32 %v596_v11 }
 0x328   : > { %v1436_v47 = vpop.eup %1435 }
 0x329   : > { %v1438_v52 = vpop.eup %1437  ;;  %v957_v53 = vmul.f32 %v1436_v47, %v1935_v54 }
 0x32a   : > { %v598_v37 = vmul.f32 %v1438_v52, %v1937_v55 }
 0x32b   : > { %1218 = vst.msk [vmem:[%s1996_s18 + $0x1] sm:$0x1] %vm566_vm1, %v957_v53  ;;  %v962_v55 = vmul.f32 %v957_v53, %v906_v58  ;;  %v966_v5 = vmul.f32 %v957_v53, %v926_v1  ;;  %v958_v6 = vmul.f32 %v957_v53, %v886_v2 }
 0x32c   : > { %v607_v41 = vmul.f32 %v598_v37, %v565_v56  ;;  %v603_v60 = vmul.f32 %v598_v37, %v545_v57  ;;  %632 = vst.msk [vmem:[%s1996_s18] sm:$0x1] %vm566_vm1, %v598_v37  ;;  %v599_v0 = vmul.f32 %v598_v37, %v525_v59 }
 0x32d   : > { %v963_v3 = vsel %vm566_vm1, %v962_v55, 0.0  ;;  %v967_v7 = vsel %vm566_vm1, %v966_v5, 0.0  ;;  %v959_v8 = vsel %vm566_vm1, %v958_v6, 0.0 }
 0x32e   : > { %v608_v54 = vsel %vm566_vm1, %v607_v41, 0.0  ;;  %v604_v63 = vsel %vm566_vm1, %v603_v60, 0.0  ;;  %v600_v4 = vsel %vm566_vm1, %v599_v0, 0.0 }
 0x32f   : > { %609 = vadd.xlane.f32.xlu1 %v608_v54  ;;  %605 = vadd.xlane.f32.xlu0 %v604_v63 }
 0x333   : > { %964 = vadd.xlane.f32.xlu0 %v963_v3  ;;  %601 = vadd.xlane.f32.xlu1 %v600_v4 }
 0x337   : > { %968 = vadd.xlane.f32.xlu0 %v967_v7  ;;  %960 = vadd.xlane.f32.xlu1 %v959_v8 }
 0x3bc   : > { %v610_v11 = vpop.xlane.xlu1 %609  ;;  %v606_v12 = vpop.xlane.xlu0 %605 }
 0x3bd   : > { %v612_v10 = vrot.slane %v606_v12, 7  ;;  %v615_v13 = vrot.slane %v610_v11, 6 }
 0x3c0   : > { %v965_v14 = vpop.xlane.xlu0 %964  ;;  %v602_v15 = vpop.xlane.xlu1 %601 }
 0x3c1   : > { %v618_v16 = vsel %vm617_vm2, %v602_v15, %v612_v10  ;;  %v622_v17 = vsel %vm621_vm3, %v602_v15, %v606_v12  ;;  %v971_v20 = vrot.slane %v965_v14, 7 }
 0x3c2   : > { %v624_v18 = vsel %vm623_vm4, %v622_v17, %v610_v11  ;;  %v620_v19 = vsel %vm619_vm5, %v618_v16, %v615_v13 }
 0x3c3   : > { %634 = vst.msk [vmem:[%s256_s21] sm:$0x1] %vm633_vm6, %v624_v18  ;;  %627 = vperm.xlu0 %1429, %v620_v19  }
 0x3c4   : > { %v969_v21 = vpop.xlane.xlu0 %968  ;;  %v961_v22 = vpop.xlane.xlu1 %960 }
 0x3c5   : > { %v974_v23 = vrot.slane %v969_v21, 6  ;;  %v976_v24 = vsel %vm617_vm2, %v961_v22, %v971_v20  ;;  %v978_v25 = vsel %vm621_vm3, %v961_v22, %v965_v14 }
 0x3c6   : > { %v979_v28 = vsel %vm623_vm4, %v978_v25, %v969_v21 }
 0x3c7   : > { %1219 = vst.msk [vmem:[%s256_s21 + $0x1] sm:$0x1] %vm633_vm6, %v979_v28  ;;  %v977_v29 = vsel %vm619_vm5, %v976_v24, %v974_v23 }
 0x3c8   : > { %982 = vperm.xlu1 %1430, %v977_v29  }
 0x3c9   : > { %1524 = shalt.err (!%p1521_p5)
}
 0x3ca   : > { %s1525_s16 = scalar_lea.hbm %s2024_s23, 32  ;;  %s1529_s19 = scalar_lea.hbm %s2083_s10, 64 }
 0x3cb   : > { %p1526_p6 = scmp.ne.s32.totalorder %s2024_s23, %s1525_s16  ;;  %p1530_p11 = scmp.lt.u32.totalorder %s2024_s23, %s2083_s10 }
 0x3cc   : > { %p1531_p12 = scmp.lt.u32.totalorder %s1529_s19, %s1525_s16  ;;  %p1533_p0 = scmp.lt.u32.totalorder %s1525_s16, %s2024_s23 }
 0x3cd   : > { %p1527_p9 = pnand %p1526_p6, %p1709_p7 }
 0x3ce   : > { %p1532_p13 = por %p1531_p12, %p1530_p11 }
 0x3cf   : > { %p1528_p10 = pneg %p1527_p9 }
 0x3d0   : > { %p1534_p1 = por %p1533_p0, %p1532_p13 }
 0x3d2   : > { %p1535_p2 = pnand %p1534_p1, %p1528_p10 }
 0x3d4   : > { %1538 = shalt.err (!%p1535_p2)
}
 0x3d5   : > { %s1588_s22 = smov 16   ;;  %s1589_s4 = smov 1  }
 0x3d6   : > { %1378 = dma.vmem_to_hbm [thread:$0]  (%p1709_p7), %s2027_s26, 32, %s2024_s23, %s2031_s28, %s1588_s22, %s1588_s22, %s1589_s4  }
 0x3d7   : > { %s250_s6 = scalar_lea.vmem %s2082_s9, %s1136_s29 }
 0x442   : > { %v628_v30 = vpop.permute.xlu0 %627 }
 0x443   : > { %v630_v31 = vsub.f32 %v1776_v26, %v628_v30 }
 0x445   : > { %631 = vst [vmem:[%s250_s6] sm:$0x7] %v630_v31 }
 0x447   : > { %v983_v32 = vpop.permute.xlu1 %982 }
 0x448   : > { %v985_v33 = vsub.f32 %v1778_v27, %v983_v32 }
 0x44a   : > { %1217 = vst [vmem:[%s250_s6 + $0x4] sm:$0x7] %v985_v33 }
 0x44b PF: > { %p1384_p3 = scmp.ge.s32.totalorder %s1575_s1, 2  ;;  %s1046_s12 = sand.u32 1, %s1563_s24  }
 0x44c   : > { %s1047_s15 = scalar_lea.sflag [#allocation11], %s1046_s12 }
 0x44d   : > { %p1381_p7 = pnand %p1384_p3, %p1713_p8 }
 0x44f   : > { %1558 = dma.done.wait (!%p1381_p7), %s1047_s15, 32  }
 0x450   : > { %1560 = vsyncadd (!%p1381_p7), %s1047_s15, 4294967264  ;;  %p49_p4 = scmp.ge.s32.totalorder %s1696_s27, 4   ;;  %s2093_s24 = smov %s1567_s25 }
 0x451   : > { %s2094_s25 = smov %s1571_s0  ;;  %s2095_s0 = smov %s1707_s30 }
 0x452   : > { %s2096_s1 = smov %s1696_s27  ;;  %51 = sbr.rel (!%p49_p4) target bundleno = 70 (0x46), region = 91 }
 0x459   :  { %1059 = vsyncpa [#allocation11], 1 }
 0x45a   :  { %1061 = vsyncpa [#allocation11 + $0x1], 1 }

</bundles_post_ra>
